<compile_context>
chip_gen: v5e
topology: v5e:2x2
jax: 0.10.0
libtpu: 0.0.40
codegen_flags: <defaults>
</compile_context>

<pallas_src>
import jax
import jax.numpy as jnp
from jax.experimental import pallas as pl
from jax.experimental.pallas import tpu as pltpu

HIDDEN = 1024
BN_EPS = 1e-5


def _round_up(n, m):
    return ((n + m - 1) // m) * m


def encoder_kernel(x_ref, w1_ref, b1_ref, gamma_ref, beta_ref,
                   wml_ref, bml_ref, eps_ref, out_ref):
    # ---- fc1: bf16 operands on the MXU, f32 accumulation --------------------
    h_pre = jnp.dot(x_ref[...], w1_ref[...],
                    preferred_element_type=jnp.float32) + b1_ref[...]

    # ---- BatchNorm1d (training mode), fused single-pass stats, all in f32 ---
    inv_b = 1.0 / h_pre.shape[0]
    s = jnp.sum(h_pre, axis=0, keepdims=True)
    ss = jnp.sum(h_pre * h_pre, axis=0, keepdims=True)
    mean = s * inv_b
    var = ss * inv_b - mean * mean                 # biased batch variance
    h = jnp.maximum((h_pre - mean) * jax.lax.rsqrt(var + BN_EPS)
                    * gamma_ref[...] + beta_ref[...], 0.0)     # ReLU

    # ---- fused fc_mu | fc_logvar: one lane-dense MXU pass --------------------
    # wml layout: [wmu padded to LPAD lanes | wlv padded to LPAD lanes]
    lpad = eps_ref.shape[1]                        # static, multiple of 128
    ml = jnp.dot(h.astype(jnp.bfloat16), wml_ref[...],
                 preferred_element_type=jnp.float32) + bml_ref[...]
    mu = ml[:, :lpad]                              # slices at 128-lane tiles
    logvar = ml[:, lpad:]

    # ---- reparameterize: z = mu + eps * exp(0.5 * logvar) --------------------
    z = mu + eps_ref[...] * jnp.exp(0.5 * logvar)

    # Single packed, lane-dense output slab: [z | mu | logvar].
    out_ref[...] = jnp.concatenate([z, mu, logvar], axis=1).astype(out_ref.dtype)


def encoder_forward(x, params, eps):
    B, D = x.shape
    L = params["wmu"].shape[1]
    KPAD = _round_up(D, 128)       # fill MXU contraction dim
    LPAD = _round_up(L, 128)       # lane-dense per-head output width

    # Zero-pad K (exact math) and move heavy operands to bf16.
    x_p = jnp.pad(x, ((0, 0), (0, KPAD - D))).astype(jnp.bfloat16)
    w1_p = jnp.pad(params["w1"], ((0, KPAD - D), (0, 0))).astype(jnp.bfloat16)

    # Fuse fc_mu | fc_logvar into one (HIDDEN, 2*LPAD) bf16 weight.
    wml = jnp.concatenate(
        [jnp.pad(params["wmu"], ((0, 0), (0, LPAD - L))),
         jnp.pad(params["wlv"], ((0, 0), (0, LPAD - L)))],
        axis=1).astype(jnp.bfloat16)
    bml = jnp.concatenate(
        [jnp.pad(params["bmu"], ((0, 0), (0, LPAD - L))),
         jnp.pad(params["blv"], ((0, 0), (0, LPAD - L)))], axis=1)

    eps_p = jnp.pad(eps, ((0, 0), (0, LPAD - L))).astype(jnp.float32)

    # Advisory cost estimate for XLA's scheduler.
    flops = 2 * B * KPAD * HIDDEN + 2 * B * HIDDEN * (2 * LPAD)
    bytes_accessed = (
        B * KPAD * 2 + KPAD * HIDDEN * 2 + HIDDEN * 2 * LPAD * 2   # bf16 inputs
        + 3 * HIDDEN * 4 + 2 * LPAD * 4 + B * LPAD * 4             # f32 inputs
        + B * 3 * LPAD * 4                                         # packed output
    )
    transcendentals = B * LPAD + HIDDEN                            # exp + rsqrt

    vmem = pl.BlockSpec(memory_space=pltpu.MemorySpace.VMEM)
    slab = pl.pallas_call(
        encoder_kernel,
        out_shape=jax.ShapeDtypeStruct((B, 3 * LPAD), jnp.float32),
        in_specs=[vmem] * 8,
        out_specs=vmem,
        cost_estimate=pl.CostEstimate(flops=flops,
                                      transcendentals=transcendentals,
                                      bytes_accessed=bytes_accessed),
    )(x_p, w1_p, params["b1"], params["gamma"], params["beta"], wml, bml, eps_p)

    z = slab[:, :L]
    mu = slab[:, LPAD:LPAD + L]
    logvar = slab[:, 2 * LPAD:2 * LPAD + L]
    return z, mu, logvar


def init_params(key, input_dim, latent_dim):
    # Deterministic synthetic init (the original uses an init_weights helper).
    k1, k2, k3 = jax.random.split(key, 3)
    scale1 = 1.0 / jnp.sqrt(jnp.float32(input_dim))
    scale2 = 1.0 / jnp.sqrt(jnp.float32(HIDDEN))
    return {
        # Stored transposed relative to PyTorch: (in, out). f32 master copies.
        "w1": jax.random.normal(k1, (input_dim, HIDDEN), jnp.float32) * scale1,
        "b1": jnp.zeros((1, HIDDEN), jnp.float32),
        "gamma": jnp.ones((1, HIDDEN), jnp.float32),   # BatchNorm1d weight
        "beta": jnp.zeros((1, HIDDEN), jnp.float32),   # BatchNorm1d bias
        "wmu": jax.random.normal(k2, (HIDDEN, latent_dim), jnp.float32) * scale2,
        "bmu": jnp.zeros((1, latent_dim), jnp.float32),
        "wlv": jax.random.normal(k3, (HIDDEN, latent_dim), jnp.float32) * scale2,
        "blv": jnp.zeros((1, latent_dim), jnp.float32),
    }


def reference_forward(x, params, eps):
    # Pure f32 reference with full-precision matmuls (PyTorch semantics).
    hi = jax.lax.Precision.HIGHEST
    h_pre = jnp.dot(x, params["w1"], precision=hi) + params["b1"]
    mean = jnp.mean(h_pre, axis=0, keepdims=True)
    var = jnp.mean((h_pre - mean) ** 2, axis=0, keepdims=True)
    h = jnp.maximum((h_pre - mean) / jnp.sqrt(var + BN_EPS)
                    * params["gamma"] + params["beta"], 0.0)
    mu = jnp.dot(h, params["wmu"], precision=hi) + params["bmu"]
    logvar = jnp.dot(h, params["wlv"], precision=hi) + params["blv"]
    z = mu + eps * jnp.exp(0.5 * logvar)
    return z, mu, logvar


if __name__ == "__main__":
    B, INPUT_DIM, LATENT_DIM = 8, 64, 32

    key = jax.random.PRNGKey(0)
    kx, kp, ke = jax.random.split(key, 3)

    x = jax.random.normal(kx, (B, INPUT_DIM), jnp.float32)
    params = init_params(kp, INPUT_DIM, LATENT_DIM)
    eps = jax.random.normal(ke, (B, LATENT_DIM), jnp.float32)

    z, mu, logvar = encoder_forward(x, params, eps)
    jax.block_until_ready((z, mu, logvar))

    z_ref, mu_ref, lv_ref = reference_forward(x, params, eps)
    # Tolerance loosened vs. the pure-f32 reference because the kernel carries
    # weights/activations in bf16 at the MXU boundary (f32 accumulation).
    assert jnp.allclose(mu, mu_ref, atol=5e-2, rtol=5e-2)
    assert jnp.allclose(logvar, lv_ref, atol=5e-2, rtol=5e-2)
    assert jnp.allclose(z, z_ref, atol=5e-2, rtol=5e-2)

    print("KERNEL_OK")
</pallas_src>

<mosaic_0001>
module attributes {stable_mosaic.version = 11 : i64} {
  func.func @encoder_kernel(%arg0: memref<8x128xbf16, #tpu.memory_space<vmem>>, %arg1: memref<128x1024xbf16, #tpu.memory_space<vmem>>, %arg2: memref<1x1024xf32, #tpu.memory_space<vmem>>, %arg3: memref<1x1024xf32, #tpu.memory_space<vmem>>, %arg4: memref<1x1024xf32, #tpu.memory_space<vmem>>, %arg5: memref<1024x256xbf16, #tpu.memory_space<vmem>>, %arg6: memref<1x256xf32, #tpu.memory_space<vmem>>, %arg7: memref<8x128xf32, #tpu.memory_space<vmem>>, %arg8: memref<8x384xf32, #tpu.memory_space<vmem>>) attributes {dimension_semantics = [], scalar_prefetch = 0 : i64, scratch_operands = 0 : i64, tpu.core_type = #tpu.core_type<tc>} {
    %c0 = arith.constant 0 : index
    %c0_0 = arith.constant 0 : index
    %0 = vector.load %arg0[%c0, %c0_0] : memref<8x128xbf16, #tpu.memory_space<vmem>>, vector<8x128xbf16>
    %c0_1 = arith.constant 0 : index
    %c0_2 = arith.constant 0 : index
    %1 = vector.load %arg1[%c0_1, %c0_2] : memref<128x1024xbf16, #tpu.memory_space<vmem>>, vector<128x1024xbf16>
    %cst = arith.constant dense<0.000000e+00> : vector<8x1024xf32>
    %2 = tpu.matmul %0, %1, %cst {dimension_numbers = #tpu.dot_dimension_numbers<[1], [0], [0], [1], [0, 0, 1, 1], [], []>} : vector<8x128xbf16>, vector<128x1024xbf16>, vector<8x1024xf32> -> vector<8x1024xf32>
    %c0_3 = arith.constant 0 : index
    %c0_4 = arith.constant 0 : index
    %3 = vector.load %arg2[%c0_3, %c0_4] : memref<1x1024xf32, #tpu.memory_space<vmem>>, vector<1x1024xf32>
    %4 = vector.broadcast %3 : vector<1x1024xf32> to vector<8x1024xf32>
    %5 = arith.addf %2, %4 : vector<8x1024xf32>
    %cst_5 = arith.constant dense<0.000000e+00> : vector<1024xf32>
    %6 = vector.multi_reduction <add>, %5, %cst_5 [0] : vector<8x1024xf32> to vector<1024xf32>
    %7 = vector.shape_cast %6 : vector<1024xf32> to vector<1x1024xf32>
    %8 = arith.mulf %5, %5 : vector<8x1024xf32>
    %cst_6 = arith.constant dense<0.000000e+00> : vector<1024xf32>
    %9 = vector.multi_reduction <add>, %8, %cst_6 [0] : vector<8x1024xf32> to vector<1024xf32>
    %10 = vector.shape_cast %9 : vector<1024xf32> to vector<1x1024xf32>
    %cst_7 = arith.constant 1.250000e-01 : f32
    %11 = vector.broadcast %cst_7 : f32 to vector<1x1024xf32>
    %12 = arith.mulf %7, %11 : vector<1x1024xf32>
    %cst_8 = arith.constant 1.250000e-01 : f32
    %13 = vector.broadcast %cst_8 : f32 to vector<1x1024xf32>
    %14 = arith.mulf %10, %13 : vector<1x1024xf32>
    %15 = arith.mulf %12, %12 : vector<1x1024xf32>
    %16 = arith.subf %14, %15 : vector<1x1024xf32>
    %17 = vector.broadcast %12 : vector<1x1024xf32> to vector<8x1024xf32>
    %18 = arith.subf %5, %17 : vector<8x1024xf32>
    %cst_9 = arith.constant 9.99999974E-6 : f32
    %19 = vector.broadcast %cst_9 : f32 to vector<1x1024xf32>
    %20 = arith.addf %16, %19 : vector<1x1024xf32>
    %21 = math.rsqrt %20 : vector<1x1024xf32>
    %22 = vector.broadcast %21 : vector<1x1024xf32> to vector<8x1024xf32>
    %23 = arith.mulf %18, %22 : vector<8x1024xf32>
    %c0_10 = arith.constant 0 : index
    %c0_11 = arith.constant 0 : index
    %24 = vector.load %arg3[%c0_10, %c0_11] : memref<1x1024xf32, #tpu.memory_space<vmem>>, vector<1x1024xf32>
    %25 = vector.broadcast %24 : vector<1x1024xf32> to vector<8x1024xf32>
    %26 = arith.mulf %23, %25 : vector<8x1024xf32>
    %c0_12 = arith.constant 0 : index
    %c0_13 = arith.constant 0 : index
    %27 = vector.load %arg4[%c0_12, %c0_13] : memref<1x1024xf32, #tpu.memory_space<vmem>>, vector<1x1024xf32>
    %28 = vector.broadcast %27 : vector<1x1024xf32> to vector<8x1024xf32>
    %29 = arith.addf %26, %28 : vector<8x1024xf32>
    %cst_14 = arith.constant 0.000000e+00 : f32
    %30 = vector.broadcast %cst_14 : f32 to vector<8x1024xf32>
    %31 = arith.maximumf %29, %30 : vector<8x1024xf32>
    %32 = arith.truncf %31 : vector<8x1024xf32> to vector<8x1024xbf16>
    %c0_15 = arith.constant 0 : index
    %c0_16 = arith.constant 0 : index
    %33 = vector.load %arg5[%c0_15, %c0_16] : memref<1024x256xbf16, #tpu.memory_space<vmem>>, vector<1024x256xbf16>
    %cst_17 = arith.constant dense<0.000000e+00> : vector<8x256xf32>
    %34 = tpu.matmul %32, %33, %cst_17 {dimension_numbers = #tpu.dot_dimension_numbers<[1], [0], [0], [1], [0, 0, 1, 1], [], []>} : vector<8x1024xbf16>, vector<1024x256xbf16>, vector<8x256xf32> -> vector<8x256xf32>
    %c0_18 = arith.constant 0 : index
    %c0_19 = arith.constant 0 : index
    %35 = vector.load %arg6[%c0_18, %c0_19] : memref<1x256xf32, #tpu.memory_space<vmem>>, vector<1x256xf32>
    %36 = vector.broadcast %35 : vector<1x256xf32> to vector<8x256xf32>
    %37 = arith.addf %34, %36 : vector<8x256xf32>
    %38 = vector.extract_strided_slice %37 {offsets = [0, 0], sizes = [8, 128], strides = [1, 1]} : vector<8x256xf32> to vector<8x128xf32>
    %39 = vector.extract_strided_slice %37 {offsets = [0, 128], sizes = [8, 128], strides = [1, 1]} : vector<8x256xf32> to vector<8x128xf32>
    %c0_20 = arith.constant 0 : index
    %c0_21 = arith.constant 0 : index
    %40 = vector.load %arg7[%c0_20, %c0_21] : memref<8x128xf32, #tpu.memory_space<vmem>>, vector<8x128xf32>
    %cst_22 = arith.constant 5.000000e-01 : f32
    %41 = vector.broadcast %cst_22 : f32 to vector<8x128xf32>
    %42 = arith.mulf %41, %39 : vector<8x128xf32>
    %43 = math.exp %42 : vector<8x128xf32>
    %44 = arith.mulf %40, %43 : vector<8x128xf32>
    %45 = arith.addf %38, %44 : vector<8x128xf32>
    %46 = tpu.concatenate %45, %38, %39 in 1 : vector<8x128xf32>, vector<8x128xf32>, vector<8x128xf32> -> vector<8x384xf32>
    %c0_23 = arith.constant 0 : index
    %c0_24 = arith.constant 0 : index
    %47 = vector.load %arg8[%c0_23, %c0_24] : memref<8x384xf32, #tpu.memory_space<vmem>>, vector<8x384xf32>
    tpu.vector_store %arg8[%c0_23, %c0_24], %46 {strides = array<i32>} : memref<8x384xf32, #tpu.memory_space<vmem>>, vector<8x384xf32>,
    return
  }
}

</mosaic_0001>

<bundles_post_ra>
// kernel: tpu_custom_call.1
= control target key start
LH: loop header
LB: loop body
LE: loop exit
PB: predicated region body
PF: predicated region fallthrough
CT: control target
= control target key end

     0   :  { %13 = vsyncpa [#allocation3], 0  ;;  %s3587_s0 = inlined_call_operand.hbm [shape: bf16[8,128], index: 0, kind: input, shape index: {}]   ;;  %s3588_s1 = inlined_call_operand.hbm [shape: bf16[128,1024], index: 1, kind: input, shape index: {}]   ;;  %s3589_s2 = inlined_call_operand.hbm [shape: f32[1,1024], index: 2, kind: input, shape index: {}]   ;;  %s3590_s3 = inlined_call_operand.hbm [shape: f32[1,1024], index: 3, kind: input, shape index: {}]   ;;  %s3591_s4 = inlined_call_operand.hbm [shape: f32[1,1024], index: 4, kind: input, shape index: {}]   ;;  %s3592_s5 = inlined_call_operand.hbm [shape: bf16[1024,256], index: 5, kind: input, shape index: {}]   ;;  %s3593_s6 = inlined_call_operand.vmem [shape: f32[1,256], index: 6, kind: input, shape index: {}]   ;;  %s3594_s7 = inlined_call_operand.hbm [shape: f32[8,128], index: 7, kind: input, shape index: {}]   ;;  %s3595_s8 = inlined_call_operand.hbm [shape: f32[8,384], index: 8, kind: output, shape index: {}]  }
   0x1   :  { %14 = vsyncpa [#allocation6], 0 }
   0x2   :  { %15 = vsyncpa [#allocation9], 0 }
   0x3   :  { %16 = vsyncpa [#allocation12], 0  ;;  %s33_s29 = sshll.u32 %s3588_s1, 4  ;;  %s34_s29 = int_to_ptr.hbm [resolvable:$true] %s33_s29 }
   0x4   :  { %17 = vsyncpa [#allocation4], 0  ;;  %s3147_s30 = smov [#allocation5]   ;;  %s58_s12 = sshll.u32 %s3590_s3, 4  ;;  %s59_s12 = int_to_ptr.hbm [resolvable:$true] %s58_s12 }
   0x5   :  { %s35_s9 = sshll.u32 %s3147_s30, 4  ;;  %s3148_s13 = smov 512   ;;  %s36_s9 = int_to_ptr.vmem [resolvable:$true] %s35_s9 }
   0x6   :  { %s3149_s14 = smov 32   ;;  %s3150_s15 = smov [#allocation8]  }
   0x7   :  { %41 = dma.hbm_to_vmem [thread:$0]  %s34_s29, 8192, %s36_s9, [#allocation6], %s3148_s13, %s3148_s13, %s3149_s14  }
   0x8   :  { %s60_s16 = sshll.u32 %s3150_s15, 4  ;;  %s79_s19 = sshll.u32 %s3592_s5, 4  ;;  %s61_s16 = int_to_ptr.vmem [resolvable:$true] %s60_s16  ;;  %s80_s19 = int_to_ptr.hbm [resolvable:$true] %s79_s19 }
   0x9   :  { %63 = dma.hbm_to_vmem [thread:$0]  %s59_s12, 128, %s61_s16, [#allocation9]  }
   0xa   :  { %s3151_s1 = smov [#allocation11]   ;;  %s23_s3 = sshll.u32 %s3587_s0, 4  ;;  %s24_s3 = int_to_ptr.hbm [resolvable:$true] %s23_s3 }
   0xb   :  { %s81_s20 = sshll.u32 %s3151_s1, 4  ;;  %s3152_s23 = smov 128   ;;  %s82_s20 = int_to_ptr.vmem [resolvable:$true] %s81_s20 }
   0xc   :  { %s3153_s24 = smov 8   ;;  %s3154_s25 = smov [#allocation2]  }
   0xd   :  { %87 = dma.hbm_to_vmem [thread:$0]  %s80_s19, 16384, %s82_s20, [#allocation12], %s3152_s23, %s3152_s23, %s3153_s24  }
   0xe   :  { %s25_s26 = sshll.u32 %s3154_s25, 4  ;;  %s47_s5 = sshll.u32 %s3589_s2, 4  ;;  %s26_s26 = int_to_ptr.vmem [resolvable:$true] %s25_s26  ;;  %s48_s5 = int_to_ptr.hbm [resolvable:$true] %s47_s5 }
   0xf   :  { %28 = dma.hbm_to_vmem [thread:$0]  %s24_s3, 64, %s26_s26, [#allocation3]  }
  0x10   :  { %s69_s9 = sshll.u32 %s3591_s4, 4  ;;  %s3155_s10 = smov [#allocation7]   ;;  %s70_s9 = int_to_ptr.hbm [resolvable:$true] %s69_s9 }
  0x11   :  { %s49_s11 = sshll.u32 %s3155_s10, 4  ;;  %s3156_s0 = smov [#allocation10]   ;;  %s50_s11 = int_to_ptr.vmem [resolvable:$true] %s49_s11 }
  0x12   :  { %52 = dma.hbm_to_vmem [thread:$0]  %s48_s5, 128, %s50_s11, [#allocation6]  }
  0x13   :  { %s71_s12 = sshll.u32 %s3156_s0, 4  ;;  %s95_s15 = sshll.u32 %s3594_s7, 4  ;;  %s72_s12 = int_to_ptr.vmem [resolvable:$true] %s71_s12  ;;  %s96_s15 = int_to_ptr.hbm [resolvable:$true] %s95_s15 }
  0x14   :  { %74 = dma.hbm_to_vmem [thread:$0]  %s70_s9, 128, %s72_s12, [#allocation9]  }
  0x15   :  { %s3157_s2 = smov [#allocation13]  }
  0x16   :  { %s97_s16 = sshll.u32 %s3157_s2, 4  ;;  %s98_s16 = int_to_ptr.vmem [resolvable:$true] %s97_s16 }
  0x17   :  { %100 = dma.hbm_to_vmem [thread:$0]  %s96_s15, 128, %s98_s16, [#allocation12]  }
  0x18   :  { %3137 = dma.done.wait [#allocation3], 64  }
  0x19   :  { %3138 = vsyncadd [#allocation3], 4294967232 }
  0x1a   :  { %3139 = dma.done.wait [#allocation6], 8320  }
  0x1b   :  { %3140 = vsyncadd [#allocation6], 4294958976 }
  0x1c   :  { %3141 = dma.done.wait [#allocation9], 256  }
  0x1d   :  { %3142 = vsyncadd [#allocation9], 4294967040 }
  0x1e   :  { %3143 = dma.done.wait [#allocation12], 16512  }
  0x1f   :  { %3144 = vsyncadd [#allocation12], 4294950784  ;;  %v2181_v0 = vld [vmem:[#allocation5 + $0x1c0] sm:$0xf]  ;;  %v2779_v2 = vld [vmem:[#allocation5 + $0x1c4] sm:$0xf] }
  0x20   :  { %v2783_v1 = vld [vmem:[#allocation5 + $0x1dc] sm:$0xf0]  ;;  %v2183_v4 = vld [vmem:[#allocation5 + $0x1e0] sm:$0xf0]  ;;  %v2189_v5 = vld [vmem:[#allocation5 + $0x1c8] sm:$0xf] }
  0x21   :  { %v2182_v3 = vor.u32 %v2783_v1, %v2181_v0  ;;  %v2784_v6 = vld [vmem:[#allocation5 + $0x1e4] sm:$0xf0]  ;;  %v2186_v7 = vor.u32 %v2779_v2, %v2183_v4  ;;  %v2780_v9 = vld [vmem:[#allocation5 + $0x1cc] sm:$0xf]  ;;  %v2149_v11 = vld [vmem:[#allocation5 + $0x180] sm:$0xf] }
  0x22   :  { %v2190_v8 = vor.u32 %v2784_v6, %v2189_v5  ;;  %v2191_v10 = vld [vmem:[#allocation5 + $0x1e8] sm:$0xf0]  ;;  %v2775_v13 = vld [vmem:[#allocation5 + $0x19c] sm:$0xf0]  ;;  %v2771_v14 = vld [vmem:[#allocation5 + $0x184] sm:$0xf] }
  0x23   :  { %532 = vmatpush.bf16.msra.mxu0 %v2182_v3  ;;  %v2194_v12 = vor.u32 %v2780_v9, %v2191_v10  ;;  %v2151_v15 = vld [vmem:[#allocation5 + $0x1a0] sm:$0xf0]  ;;  %545 = vmatpush.bf16.msra.mxu1 %v2186_v7  ;;  %v2150_v16 = vor.u32 %v2775_v13, %v2149_v11  ;;  %v2157_v18 = vld [vmem:[#allocation5 + $0x188] sm:$0xf]  ;;  %v2772_v20 = vld [vmem:[#allocation5 + $0x18c] sm:$0xf] }
  0x24   :  { %558 = vmatpush.bf16.msra.mxu2 %v2190_v8  ;;  %v2154_v17 = vor.u32 %v2771_v14, %v2151_v15  ;;  %v2776_v19 = vld [vmem:[#allocation5 + $0x1a4] sm:$0xf0]  ;;  %v2159_v22 = vld [vmem:[#allocation5 + $0x1a8] sm:$0xf0]  ;;  %v2117_v23 = vld [vmem:[#allocation5 + $0x140] sm:$0xf] }
  0x25   :  { %571 = vmatpush.bf16.msra.mxu3 %v2194_v12  ;;  %v2158_v21 = vor.u32 %v2776_v19, %v2157_v18  ;;  %v2767_v24 = vld [vmem:[#allocation5 + $0x15c] sm:$0xf0]  ;;  %v2162_v25 = vor.u32 %v2772_v20, %v2159_v22  ;;  %v2763_v26 = vld [vmem:[#allocation5 + $0x144] sm:$0xf]  ;;  %v2125_v28 = vld [vmem:[#allocation5 + $0x148] sm:$0xf] }
  0x26   :  { %v2119_v27 = vld [vmem:[#allocation5 + $0x160] sm:$0xf0]  ;;  %v2118_v29 = vor.u32 %v2767_v24, %v2117_v23  ;;  %v2768_v30 = vld [vmem:[#allocation5 + $0x164] sm:$0xf0]  ;;  %v2764_v31 = vld [vmem:[#allocation5 + $0x14c] sm:$0xf] }
  0x27   :  { %533 = vmatpush.bf16.msra.mxu0 %v2150_v16  ;;  %v2127_v32 = vld [vmem:[#allocation5 + $0x168] sm:$0xf0]  ;;  %546 = vmatpush.bf16.msra.mxu1 %v2154_v17  ;;  %v2122_v33 = vor.u32 %v2763_v26, %v2119_v27  ;;  %v2126_v34 = vor.u32 %v2768_v30, %v2125_v28  ;;  %v2085_v35 = vld [vmem:[#allocation5 + $0x100] sm:$0xf]  ;;  %v2755_v37 = vld [vmem:[#allocation5 + $0x104] sm:$0xf] }
  0x28   :  { %559 = vmatpush.bf16.msra.mxu2 %v2158_v21  ;;  %v2759_v36 = vld [vmem:[#allocation5 + $0x11c] sm:$0xf0]  ;;  %v2130_v38 = vor.u32 %v2764_v31, %v2127_v32  ;;  %v2087_v39 = vld [vmem:[#allocation5 + $0x120] sm:$0xf0]  ;;  %v2093_v40 = vld [vmem:[#allocation5 + $0x108] sm:$0xf] }
  0x29   :  { %572 = vmatpush.bf16.msra.mxu3 %v2162_v25  ;;  %v2760_v41 = vld [vmem:[#allocation5 + $0x124] sm:$0xf0]  ;;  %v2756_v42 = vld [vmem:[#allocation5 + $0x10c] sm:$0xf]  ;;  %v2086_v44 = vor.u32 %v2759_v36, %v2085_v35  ;;  %v2090_v45 = vor.u32 %v2755_v37, %v2087_v39  ;;  %v2053_v47 = vld [vmem:[#allocation5 + $0xc0] sm:$0xf] }
  0x2a   :  { %v2095_v43 = vld [vmem:[#allocation5 + $0x128] sm:$0xf0]  ;;  %v2094_v46 = vor.u32 %v2760_v41, %v2093_v40  ;;  %v2751_v48 = vld [vmem:[#allocation5 + $0xdc] sm:$0xf0]  ;;  %v2747_v49 = vld [vmem:[#allocation5 + $0xc4] sm:$0xf] }
  0x2b   :  { %534 = vmatpush.bf16.msra.mxu0 %v2118_v29  ;;  %547 = vmatpush.bf16.msra.mxu1 %v2122_v33  ;;  %v2098_v50 = vor.u32 %v2756_v42, %v2095_v43  ;;  %v2055_v51 = vld [vmem:[#allocation5 + $0xe0] sm:$0xf0]  ;;  %v2061_v52 = vld [vmem:[#allocation5 + $0xc8] sm:$0xf]  ;;  %v2748_v54 = vld [vmem:[#allocation5 + $0xcc] sm:$0xf]  ;;  %v2054_v56 = vor.u32 %v2751_v48, %v2053_v47 }
  0x2c   :  { %560 = vmatpush.bf16.msra.mxu2 %v2126_v34  ;;  %v2752_v53 = vld [vmem:[#allocation5 + $0xe4] sm:$0xf0]  ;;  %v2063_v55 = vld [vmem:[#allocation5 + $0xe8] sm:$0xf0]  ;;  %v2058_v57 = vor.u32 %v2747_v49, %v2055_v51  ;;  %v2021_v59 = vld [vmem:[#allocation5 + $0x80] sm:$0xf] }
  0x2d   :  { %573 = vmatpush.bf16.msra.mxu3 %v2130_v38  ;;  %v2062_v58 = vor.u32 %v2752_v53, %v2061_v52  ;;  %v2743_v60 = vld [vmem:[#allocation5 + $0x9c] sm:$0xf0]  ;;  %v2739_v61 = vld [vmem:[#allocation5 + $0x84] sm:$0xf]  ;;  %v2066_v62 = vor.u32 %v2748_v54, %v2063_v55  ;;  %v2029_v0 = vld [vmem:[#allocation5 + $0x88] sm:$0xf] }
  0x2e   :  { %v2023_v63 = vld [vmem:[#allocation5 + $0xa0] sm:$0xf0]  ;;  %v2744_v1 = vld [vmem:[#allocation5 + $0xa4] sm:$0xf0]  ;;  %v2740_v2 = vld [vmem:[#allocation5 + $0x8c] sm:$0xf]  ;;  %v2022_v4 = vor.u32 %v2743_v60, %v2021_v59 }
  0x2f   :  { %535 = vmatpush.bf16.msra.mxu0 %v2086_v44  ;;  %548 = vmatpush.bf16.msra.mxu1 %v2090_v45  ;;  %v2031_v3 = vld [vmem:[#allocation5 + $0xa8] sm:$0xf0]  ;;  %v2026_v5 = vor.u32 %v2739_v61, %v2023_v63  ;;  %v2030_v6 = vor.u32 %v2744_v1, %v2029_v0  ;;  %v1989_v7 = vld [vmem:[#allocation5 + $0x40] sm:$0xf]  ;;  %v2731_v9 = vld [vmem:[#allocation5 + $0x44] sm:$0xf] }
  0x30   :  { %561 = vmatpush.bf16.msra.mxu2 %v2094_v46  ;;  %v2735_v8 = vld [vmem:[#allocation5 + $0x5c] sm:$0xf0]  ;;  %v2034_v10 = vor.u32 %v2740_v2, %v2031_v3  ;;  %v1991_v11 = vld [vmem:[#allocation5 + $0x60] sm:$0xf0]  ;;  %v1997_v12 = vld [vmem:[#allocation5 + $0x48] sm:$0xf] }
  0x31   :  { %574 = vmatpush.bf16.msra.mxu3 %v2098_v50  ;;  %v2736_v13 = vld [vmem:[#allocation5 + $0x64] sm:$0xf0]  ;;  %v2732_v14 = vld [vmem:[#allocation5 + $0x4c] sm:$0xf]  ;;  %v1990_v16 = vor.u32 %v2735_v8, %v1989_v7  ;;  %v1957_v17 = vld [vmem:[#allocation5] sm:$0xf]  ;;  %v1994_v19 = vor.u32 %v2731_v9, %v1991_v11 }
  0x32   :  { %v1999_v15 = vld [vmem:[#allocation5 + $0x68] sm:$0xf0]  ;;  %v2727_v18 = vld [vmem:[#allocation5 + $0x1c] sm:$0xf0]  ;;  %v1998_v20 = vor.u32 %v2736_v13, %v1997_v12  ;;  %v2723_v21 = vld [vmem:[#allocation5 + $0x4] sm:$0xf] }
  0x33   :  { %536 = vmatpush.bf16.msra.mxu0 %v2054_v56  ;;  %549 = vmatpush.bf16.msra.mxu1 %v2058_v57  ;;  %v1959_v22 = vld [vmem:[#allocation5 + $0x20] sm:$0xf0]  ;;  %v1965_v23 = vld [vmem:[#allocation5 + $0x8] sm:$0xf]  ;;  %v2002_v24 = vor.u32 %v2732_v14, %v1999_v15  ;;  %v2724_v26 = vld [vmem:[#allocation5 + $0xc] sm:$0xf]  ;;  %v1958_v31 = vor.u32 %v2727_v18, %v1957_v17 }
  0x34   :  { %562 = vmatpush.bf16.msra.mxu2 %v2062_v58  ;;  %v2728_v25 = vld [vmem:[#allocation5 + $0x24] sm:$0xf0]  ;;  %v1967_v27 = vld [vmem:[#allocation5 + $0x28] sm:$0xf0]  ;;  %v2197_v28 = vld [vmem:[#allocation5 + $0x1d0] sm:$0xf]  ;;  %v1962_v35 = vor.u32 %v2723_v21, %v1959_v22 }
  0x35   :  { %575 = vmatpush.bf16.msra.mxu3 %v2066_v62  ;;  %v2785_v29 = vld [vmem:[#allocation5 + $0x1ec] sm:$0xf0]  ;;  %v2781_v30 = vld [vmem:[#allocation5 + $0x1d4] sm:$0xf]  ;;  %v2205_v33 = vld [vmem:[#allocation5 + $0x1d8] sm:$0xf]  ;;  %v1966_v36 = vor.u32 %v2728_v25, %v1965_v23  ;;  %v1970_v39 = vor.u32 %v2724_v26, %v1967_v27 }
  0x36   :  { %v2199_v32 = vld [vmem:[#allocation5 + $0x1f0] sm:$0xf0]  ;;  %v2786_v34 = vld [vmem:[#allocation5 + $0x1f4] sm:$0xf0]  ;;  %v2782_v37 = vld [vmem:[#allocation5 + $0x1dc] sm:$0xf]  ;;  %v2198_v40 = vor.u32 %v2785_v29, %v2197_v28 }
  0x37   :  { %537 = vmatpush.bf16.msra.mxu0 %v2022_v4  ;;  %550 = vmatpush.bf16.msra.mxu1 %v2026_v5  ;;  %v2207_v38 = vld [vmem:[#allocation5 + $0x1f8] sm:$0xf0]  ;;  %v2202_v41 = vor.u32 %v2781_v30, %v2199_v32  ;;  %v2206_v42 = vor.u32 %v2786_v34, %v2205_v33  ;;  %v2165_v43 = vld [vmem:[#allocation5 + $0x190] sm:$0xf]  ;;  %v2773_v45 = vld [vmem:[#allocation5 + $0x194] sm:$0xf] }
  0x38   :  { %563 = vmatpush.bf16.msra.mxu2 %v2030_v6  ;;  %v2777_v44 = vld [vmem:[#allocation5 + $0x1ac] sm:$0xf0]  ;;  %v2210_v46 = vor.u32 %v2782_v37, %v2207_v38  ;;  %v2167_v47 = vld [vmem:[#allocation5 + $0x1b0] sm:$0xf0]  ;;  %v2173_v48 = vld [vmem:[#allocation5 + $0x198] sm:$0xf] }
  0x39   :  { %576 = vmatpush.bf16.msra.mxu3 %v2034_v10  ;;  %v2778_v49 = vld [vmem:[#allocation5 + $0x1b4] sm:$0xf0]  ;;  %v3225_v50 = vld [vmem:[#allocation2] sm:$0xf]  ;;  %v2166_v53 = vor.u32 %v2777_v44, %v2165_v43  ;;  %v2170_v54 = vor.u32 %v2773_v45, %v2167_v47  ;;  %v2133_v56 = vld [vmem:[#allocation5 + $0x150] sm:$0xf] }
  0x3a   :  { %v2774_v51 = vld [vmem:[#allocation5 + $0x19c] sm:$0xf]  ;;  %v2174_v55 = vor.u32 %v2778_v49, %v2173_v48  ;;  %v2769_v57 = vld [vmem:[#allocation5 + $0x16c] sm:$0xf0]  ;;  %v2765_v58 = vld [vmem:[#allocation5 + $0x154] sm:$0xf] }
  0x3b   :  { %538 = vmatpush.bf16.msra.mxu0 %v1990_v16  ;;  %551 = vmatpush.bf16.msra.mxu1 %v1994_v19  ;;  %v2175_v52 = vld [vmem:[#allocation5 + $0x1b8] sm:$0xf0]  ;;  %v2135_v60 = vld [vmem:[#allocation5 + $0x170] sm:$0xf0]  ;;  %v2141_v61 = vld [vmem:[#allocation5 + $0x158] sm:$0xf]  ;;  %v2134_v1 = vor.u32 %v2769_v57, %v2133_v56 }
  0x3c   :  { %564 = vmatpush.bf16.msra.mxu2 %v1998_v20  ;;  %v2178_v59 = vor.u32 %v2774_v51, %v2175_v52  ;;  %v2770_v62 = vld [vmem:[#allocation5 + $0x174] sm:$0xf0]  ;;  %v2766_v63 = vld [vmem:[#allocation5 + $0x15c] sm:$0xf]  ;;  %v2138_v2 = vor.u32 %v2765_v58, %v2135_v60  ;;  %v2101_v4 = vld [vmem:[#allocation5 + $0x110] sm:$0xf] }
  0x3d   :  { %577 = vmatpush.bf16.msra.mxu3 %v2002_v24  ;;  %v2143_v0 = vld [vmem:[#allocation5 + $0x178] sm:$0xf0]  ;;  %v2142_v3 = vor.u32 %v2770_v62, %v2141_v61  ;;  %v2761_v5 = vld [vmem:[#allocation5 + $0x12c] sm:$0xf0]  ;;  %v2757_v6 = vld [vmem:[#allocation5 + $0x114] sm:$0xf] }
  0x3e   :  { %v2146_v7 = vor.u32 %v2766_v63, %v2143_v0  ;;  %v2103_v8 = vld [vmem:[#allocation5 + $0x130] sm:$0xf0]  ;;  %v2109_v9 = vld [vmem:[#allocation5 + $0x118] sm:$0xf]  ;;  %v2758_v11 = vld [vmem:[#allocation5 + $0x11c] sm:$0xf]  ;;  %v2102_v13 = vor.u32 %v2761_v5, %v2101_v4 }
  0x3f   :  { %539 = vmatpush.bf16.msra.mxu0 %v1958_v31  ;;  %552 = vmatpush.bf16.msra.mxu1 %v1962_v35  ;;  %v2762_v10 = vld [vmem:[#allocation5 + $0x134] sm:$0xf0]  ;;  %v2111_v12 = vld [vmem:[#allocation5 + $0x138] sm:$0xf0]  ;;  %v2106_v14 = vor.u32 %v2757_v6, %v2103_v8  ;;  %v2069_v16 = vld [vmem:[#allocation5 + $0xd0] sm:$0xf] }
  0x40   :  { %565 = vmatpush.bf16.msra.mxu2 %v1966_v36  ;;  %v2110_v15 = vor.u32 %v2762_v10, %v2109_v9  ;;  %v2753_v17 = vld [vmem:[#allocation5 + $0xec] sm:$0xf0]  ;;  %v2749_v18 = vld [vmem:[#allocation5 + $0xd4] sm:$0xf]  ;;  %v2114_v19 = vor.u32 %v2758_v11, %v2111_v12  ;;  %v2077_v21 = vld [vmem:[#allocation5 + $0xd8] sm:$0xf] }
  0x41   :  { %578 = vmatpush.bf16.msra.mxu3 %v1970_v39  ;;  %v2071_v20 = vld [vmem:[#allocation5 + $0xf0] sm:$0xf0]  ;;  %v2754_v22 = vld [vmem:[#allocation5 + $0xf4] sm:$0xf0]  ;;  %v2750_v23 = vld [vmem:[#allocation5 + $0xdc] sm:$0xf]  ;;  %v2070_v25 = vor.u32 %v2753_v17, %v2069_v16 }
  0x42   :  { %540 = vmatmul.bf16.vlgmr.msra.gmra.mxu0 %v3225_v50  ;;  %553 = vmatmul.bf16.vlgmr.msra.gmra.mxu1 %v3225_v50  ;;  %v2079_v24 = vld [vmem:[#allocation5 + $0xf8] sm:$0xf0]  ;;  %v2074_v26 = vor.u32 %v2749_v18, %v2071_v20  ;;  %v2078_v27 = vor.u32 %v2754_v22, %v2077_v21  ;;  %v2037_v28 = vld [vmem:[#allocation5 + $0x90] sm:$0xf]  ;;  %v2741_v30 = vld [vmem:[#allocation5 + $0x94] sm:$0xf] }
  0x43   :  { %584 = vmatpush.bf16.msrb.mxu0 %v2198_v40  ;;  %597 = vmatpush.bf16.msrb.mxu1 %v2202_v41  ;;  %v2745_v29 = vld [vmem:[#allocation5 + $0xac] sm:$0xf0]  ;;  %v2082_v31 = vor.u32 %v2750_v23, %v2079_v24  ;;  %v2039_v32 = vld [vmem:[#allocation5 + $0xb0] sm:$0xf0]  ;;  %v2045_v33 = vld [vmem:[#allocation5 + $0x98] sm:$0xf] }
  0x44   :  { %610 = vmatpush.bf16.msrb.mxu2 %v2206_v42  ;;  %579 = vmatmul.bf16.vlgmr.msra.gmra.mxu3 %v3225_v50  ;;  %v2746_v34 = vld [vmem:[#allocation5 + $0xb4] sm:$0xf0]  ;;  %v2742_v35 = vld [vmem:[#allocation5 + $0x9c] sm:$0xf]  ;;  %v2038_v37 = vor.u32 %v2745_v29, %v2037_v28  ;;  %v2042_v38 = vor.u32 %v2741_v30, %v2039_v32  ;;  %v2005_v40 = vld [vmem:[#allocation5 + $0x50] sm:$0xf] }
  0x45   :  { %623 = vmatpush.bf16.msrb.mxu3 %v2210_v46  ;;  %566 = vmatmul.bf16.vlgmr.msra.gmra.mxu2 %v3225_v50  ;;  %v2047_v36 = vld [vmem:[#allocation5 + $0xb8] sm:$0xf0]  ;;  %v2046_v39 = vor.u32 %v2746_v34, %v2045_v33  ;;  %v2737_v41 = vld [vmem:[#allocation5 + $0x6c] sm:$0xf0]  ;;  %v2733_v42 = vld [vmem:[#allocation5 + $0x54] sm:$0xf] }
  0x46   :  { %v2050_v43 = vor.u32 %v2742_v35, %v2047_v36  ;;  %v2007_v44 = vld [vmem:[#allocation5 + $0x70] sm:$0xf0]  ;;  %v2013_v45 = vld [vmem:[#allocation5 + $0x58] sm:$0xf]  ;;  %v2734_v47 = vld [vmem:[#allocation5 + $0x5c] sm:$0xf]  ;;  %v2006_v49 = vor.u32 %v2737_v41, %v2005_v40 }
  0x47   :  { %585 = vmatpush.bf16.msrb.mxu0 %v2166_v53  ;;  %598 = vmatpush.bf16.msrb.mxu1 %v2170_v54  ;;  %v2738_v46 = vld [vmem:[#allocation5 + $0x74] sm:$0xf0]  ;;  %v2015_v48 = vld [vmem:[#allocation5 + $0x78] sm:$0xf0]  ;;  %v1973_v51 = vld [vmem:[#allocation5 + $0x10] sm:$0xf]  ;;  %v2010_v52 = vor.u32 %v2733_v42, %v2007_v44 }
  0x48   :  { %611 = vmatpush.bf16.msrb.mxu2 %v2174_v55  ;;  %v2014_v53 = vor.u32 %v2738_v46, %v2013_v45  ;;  %v2729_v54 = vld [vmem:[#allocation5 + $0x2c] sm:$0xf0]  ;;  %v2725_v55 = vld [vmem:[#allocation5 + $0x14] sm:$0xf]  ;;  %v2018_v57 = vor.u32 %v2734_v47, %v2015_v48  ;;  %v1981_v58 = vld [vmem:[#allocation5 + $0x18] sm:$0xf] }
  0x49   :  { %624 = vmatpush.bf16.msrb.mxu3 %v2178_v59  ;;  %v1975_v56 = vld [vmem:[#allocation5 + $0x30] sm:$0xf0]  ;;  %v2730_v59 = vld [vmem:[#allocation5 + $0x34] sm:$0xf0]  ;;  %v2726_v60 = vld [vmem:[#allocation5 + $0x1c] sm:$0xf]  ;;  %v1974_v0 = vor.u32 %v2729_v54, %v1973_v51 }
  0x4a   :  { %v1983_v61 = vld [vmem:[#allocation5 + $0x38] sm:$0xf0]  ;;  %v2269_v62 = vld [vmem:[#allocation11 + $0x70] sm:$0xf]  ;;  %v2802_v63 = vld [vmem:[#allocation11 + $0x74] sm:$0xf0]  ;;  %v1982_v4 = vor.u32 %v2730_v59, %v1981_v58 }
  0x4b   :  { %586 = vmatpush.bf16.msrb.mxu0 %v2134_v1  ;;  %599 = vmatpush.bf16.msrb.mxu1 %v2138_v2  ;;  %v2333_v1 = vld [vmem:[#allocation11 + $0xf0] sm:$0xf]  ;;  %v2818_v2 = vld [vmem:[#allocation11 + $0xf4] sm:$0xf0]  ;;  %v1986_v5 = vor.u32 %v2726_v60, %v1983_v61  ;;  %v2270_v6 = vor.u32 %v2802_v63, %v2269_v62  ;;  %v2261_v8 = vld [vmem:[#allocation11 + $0x60] sm:$0xf] }
  0x4c   :  { %612 = vmatpush.bf16.msrb.mxu2 %v2142_v3  ;;  %v1978_v3 = vor.u32 %v2725_v55, %v1975_v56  ;;  %v2800_v9 = vld [vmem:[#allocation11 + $0x64] sm:$0xf0]  ;;  %v2325_v10 = vld [vmem:[#allocation11 + $0xe0] sm:$0xf]  ;;  %v2461_v16 = vld [vmem:[#allocation11 + $0x1f0] sm:$0xf] }
  0x4d   :  { %625 = vmatpush.bf16.msrb.mxu3 %v2146_v7  ;;  %v2334_v7 = vor.u32 %v2818_v2, %v2333_v1  ;;  %v2816_v11 = vld [vmem:[#allocation11 + $0xe4] sm:$0xf0]  ;;  %v2262_v12 = vor.u32 %v2800_v9, %v2261_v8  ;;  %v2850_v18 = vld [vmem:[#allocation11 + $0x1f4] sm:$0xf0]  ;;  %v2253_v20 = vld [vmem:[#allocation11 + $0x50] sm:$0xf] }
  0x4e   :  { %v2798_v21 = vld [vmem:[#allocation11 + $0x54] sm:$0xf0]  ;;  %v2317_v23 = vld [vmem:[#allocation11 + $0xd0] sm:$0xf]  ;;  %v2453_v28 = vld [vmem:[#allocation11 + $0x1e0] sm:$0xf] }
  0x4f   :  { %587 = vmatpush.bf16.msrb.mxu0 %v2102_v13  ;;  %600 = vmatpush.bf16.msrb.mxu1 %v2106_v14  ;;  %v2326_v13 = vor.u32 %v2816_v11, %v2325_v10  ;;  %v2397_v14 = vld [vmem:[#allocation11 + $0x170] sm:$0xf]  ;;  %v2254_v22 = vor.u32 %v2798_v21, %v2253_v20  ;;  %v2814_v24 = vld [vmem:[#allocation11 + $0xd4] sm:$0xf0]  ;;  %v2848_v29 = vld [vmem:[#allocation11 + $0x1e4] sm:$0xf0] }
  0x50   :  { %613 = vmatpush.bf16.msrb.mxu2 %v2110_v15  ;;  %v2834_v15 = vld [vmem:[#allocation11 + $0x174] sm:$0xf0]  ;;  %v2454_v30 = vor.u32 %v2848_v29, %v2453_v28  ;;  %v2796_v32 = vld [vmem:[#allocation11 + $0x44] sm:$0xf0]  ;;  %v2309_v33 = vld [vmem:[#allocation11 + $0xc0] sm:$0xf] }
  0x51   :  { %626 = vmatpush.bf16.msrb.mxu3 %v2114_v19  ;;  %v2398_v17 = vor.u32 %v2834_v15, %v2397_v14  ;;  %v2462_v19 = vor.u32 %v2850_v18, %v2461_v16  ;;  %v2812_v35 = vld [vmem:[#allocation11 + $0xc4] sm:$0xf0]  ;;  %v2846_v41 = vld [vmem:[#allocation11 + $0x1d4] sm:$0xf0]  ;;  %v2301_v45 = vld [vmem:[#allocation11 + $0xb0] sm:$0xf] }
  0x52   :  { %v2310_v36 = vor.u32 %v2812_v35, %v2309_v33  ;;  %v2794_v44 = vld [vmem:[#allocation11 + $0x34] sm:$0xf0]  ;;  %v2828_v51 = vld [vmem:[#allocation11 + $0x144] sm:$0xf0]  ;;  %v2229_v56 = vld [vmem:[#allocation11 + $0x20] sm:$0xf] }
  0x53   :  { %588 = vmatpush.bf16.msrb.mxu0 %v2070_v25  ;;  %601 = vmatpush.bf16.msrb.mxu1 %v2074_v26  ;;  %v2318_v25 = vor.u32 %v2814_v24, %v2317_v23  ;;  %v2389_v26 = vld [vmem:[#allocation11 + $0x160] sm:$0xf]  ;;  %v2810_v47 = vld [vmem:[#allocation11 + $0xb4] sm:$0xf0]  ;;  %v2844_v54 = vld [vmem:[#allocation11 + $0x1c4] sm:$0xf0] }
  0x54   :  { %614 = vmatpush.bf16.msrb.mxu2 %v2078_v27  ;;  %v2832_v27 = vld [vmem:[#allocation11 + $0x164] sm:$0xf0]  ;;  %v2302_v48 = vor.u32 %v2810_v47, %v2301_v45  ;;  %v2293_v58 = vld [vmem:[#allocation11 + $0xa0] sm:$0xf]  ;;  %v2365_v62 = vld [vmem:[#allocation11 + $0x130] sm:$0xf] }
  0x55   :  { %627 = vmatpush.bf16.msrb.mxu3 %v2082_v31  ;;  %v2245_v31 = vld [vmem:[#allocation11 + $0x40] sm:$0xf]  ;;  %v2808_v60 = vld [vmem:[#allocation11 + $0xa4] sm:$0xf0]  ;;  %v2826_v63 = vld [vmem:[#allocation11 + $0x134] sm:$0xf0] }
  0x56   :  { %v2246_v34 = vor.u32 %v2796_v32, %v2245_v31  ;;  %v2294_v61 = vor.u32 %v2808_v60, %v2293_v58  ;;  %v2366_v1 = vor.u32 %v2826_v63, %v2365_v62  ;;  %v2842_v2 = vld [vmem:[#allocation11 + $0x1b4] sm:$0xf0]  ;;  %v2357_v10 = vld [vmem:[#allocation11 + $0x120] sm:$0xf]  ;;  %v2824_v11 = vld [vmem:[#allocation11 + $0x124] sm:$0xf0] }
  0x57   :  { %589 = vmatpush.bf16.msrb.mxu0 %v2038_v37  ;;  %602 = vmatpush.bf16.msrb.mxu1 %v2042_v38  ;;  %v2381_v37 = vld [vmem:[#allocation11 + $0x150] sm:$0xf]  ;;  %v2830_v38 = vld [vmem:[#allocation11 + $0x154] sm:$0xf0]  ;;  %v2358_v14 = vor.u32 %v2824_v11, %v2357_v10  ;;  %v2840_v15 = vld [vmem:[#allocation11 + $0x1a4] sm:$0xf0] }
  0x58   :  { %615 = vmatpush.bf16.msrb.mxu2 %v2046_v39  ;;  %v2445_v39 = vld [vmem:[#allocation11 + $0x1d0] sm:$0xf]  ;;  %v2382_v40 = vor.u32 %v2830_v38, %v2381_v37  ;;  %v2806_v8 = vld [vmem:[#allocation11 + $0x94] sm:$0xf0]  ;;  %v2788_v18 = vld [vmem:[#allocation11 + $0x4] sm:$0xf0] }
  0x59   :  { %628 = vmatpush.bf16.msrb.mxu3 %v2050_v43  ;;  %v2446_v42 = vor.u32 %v2846_v41, %v2445_v39  ;;  %v2237_v43 = vld [vmem:[#allocation11 + $0x30] sm:$0xf]  ;;  %v2804_v21 = vld [vmem:[#allocation11 + $0x84] sm:$0xf0]  ;;  %v2866_v23 = vld [vmem:[#allocation11 + $0x274] sm:$0xf0] }
  0x5a   :  { %v2238_v46 = vor.u32 %v2794_v44, %v2237_v43  ;;  %v2349_v28 = vld [vmem:[#allocation11 + $0x110] sm:$0xf]  ;;  %v2822_v29 = vld [vmem:[#allocation11 + $0x114] sm:$0xf0]  ;;  %v2864_v37 = vld [vmem:[#allocation11 + $0x264] sm:$0xf0] }
  0x5b   :  { %590 = vmatpush.bf16.msrb.mxu0 %v2006_v49  ;;  %603 = vmatpush.bf16.msrb.mxu1 %v2010_v52  ;;  %v2373_v49 = vld [vmem:[#allocation11 + $0x140] sm:$0xf]  ;;  %v2838_v31 = vld [vmem:[#allocation11 + $0x194] sm:$0xf0]  ;;  %v2653_v47 = vld [vmem:[#allocation11 + $0x370] sm:$0xf] }
  0x5c   :  { %616 = vmatpush.bf16.msrb.mxu2 %v2014_v53  ;;  %v2437_v52 = vld [vmem:[#allocation11 + $0x1c0] sm:$0xf]  ;;  %v2374_v53 = vor.u32 %v2828_v51, %v2373_v49  ;;  %v2898_v51 = vld [vmem:[#allocation11 + $0x374] sm:$0xf0]  ;;  %v2573_v62 = vld [vmem:[#allocation11 + $0x2d0] sm:$0xf] }
  0x5d   :  { %629 = vmatpush.bf16.msrb.mxu3 %v2018_v57  ;;  %v2438_v55 = vor.u32 %v2844_v54, %v2437_v52  ;;  %v2792_v57 = vld [vmem:[#allocation11 + $0x24] sm:$0xf0]  ;;  %v2581_v38 = vld [vmem:[#allocation11 + $0x2e0] sm:$0xf]  ;;  %v2717_v52 = vld [vmem:[#allocation11 + $0x3f0] sm:$0xf] }
  0x5e   :  { %v2230_v59 = vor.u32 %v2792_v57, %v2229_v56  ;;  %v2341_v41 = vld [vmem:[#allocation11 + $0x100] sm:$0xf]  ;;  %v2654_v56 = vor.u32 %v2898_v51, %v2653_v47  ;;  %v2509_v57 = vld [vmem:[#allocation11 + $0x250] sm:$0xf]  ;;  %v2862_v58 = vld [vmem:[#allocation11 + $0x254] sm:$0xf0] }
  0x5f   :  { %591 = vmatpush.bf16.msrb.mxu0 %v1974_v0  ;;  %604 = vmatpush.bf16.msrb.mxu1 %v1978_v3  ;;  %v2429_v0 = vld [vmem:[#allocation11 + $0x1b0] sm:$0xf]  ;;  %v2405_v45 = vld [vmem:[#allocation11 + $0x180] sm:$0xf]  ;;  %v2878_v63 = vld [vmem:[#allocation11 + $0x2d4] sm:$0xf0] }
  0x60   :  { %617 = vmatpush.bf16.msrb.mxu2 %v1982_v4  ;;  %v2430_v3 = vor.u32 %v2842_v2, %v2429_v0  ;;  %v2221_v4 = vld [vmem:[#allocation11 + $0x10] sm:$0xf]  ;;  %v2574_v2 = vor.u32 %v2878_v63, %v2573_v62  ;;  %v2912_v10 = vld [vmem:[#allocation11 + $0x3e4] sm:$0xf0]  ;;  %s1942_s1 = sshll.u32 %s3595_s8, 4  ;;  %s1943_s1 = int_to_ptr.hbm [resolvable:$true] %s1942_s1 }
  0x61   :  { %630 = vmatpush.bf16.msrb.mxu3 %v1986_v5  ;;  %v2790_v5 = vld [vmem:[#allocation11 + $0x14] sm:$0xf0] }
  0x62   :  { %592 = vmatmul.bf16.vlgmr.msrb.gmra.mxu0 %v3225_v50  ;;  %605 = vmatmul.bf16.vlgmr.msrb.gmra.mxu1 %v3225_v50 }
  0x63   :  { %1718 = vmatpush.bf16.msra.mxu0 %v2270_v6  ;;  %1731 = vmatpush.bf16.msra.mxu1 %v2334_v7  ;;  %v2285_v6 = vld [vmem:[#allocation11 + $0x90] sm:$0xf]  ;;  %v2222_v7 = vor.u32 %v2790_v5, %v2221_v4  ;;  %v2896_v4 = vld [vmem:[#allocation11 + $0x364] sm:$0xf0] }
  0x64   :  { %618 = vmatmul.bf16.vlgmr.msrb.gmra.mxu2 %v3225_v50  ;;  %631 = vmatmul.bf16.vlgmr.msrb.gmra.mxu3 %v3225_v50  ;;  %v2390_v50 = vor.u32 %v2832_v27, %v2389_v26  ;;  %v2286_v9 = vor.u32 %v2806_v8, %v2285_v6  ;;  %v2589_v26 = vld [vmem:[#allocation11 + $0x2f0] sm:$0xf]  ;;  %v2882_v27 = vld [vmem:[#allocation11 + $0x2f4] sm:$0xf0] }
  0x65   :  { %1744 = vmatpush.bf16.msra.mxu2 %v2398_v17  ;;  %1757 = vmatpush.bf16.msra.mxu3 %v2462_v19  ;;  %v2213_v17 = vld [vmem:[#allocation11] sm:$0xf] }
  0x66   :  { %v2277_v19 = vld [vmem:[#allocation11 + $0x80] sm:$0xf]  ;;  %v2214_v20 = vor.u32 %v2788_v18, %v2213_v17 }
  0x67   :  { %1719 = vmatpush.bf16.msra.mxu0 %v2262_v12  ;;  %1732 = vmatpush.bf16.msra.mxu1 %v2326_v13  ;;  %v2421_v12 = vld [vmem:[#allocation11 + $0x1a0] sm:$0xf]  ;;  %v3235_v13 = vld [vmem:[#allocation7] sm:$0xff]  ;;  %v2278_v24 = vor.u32 %v2804_v21, %v2277_v19 }
  0x68   :  { %v2422_v16 = vor.u32 %v2840_v15, %v2421_v12  ;;  %v196_v32 = vperm.slane %v3235_v13, 0  ;;  %v197_v33 = vperm.slane %v3235_v13, 1 }
  0x69   :  { %1745 = vmatpush.bf16.msra.mxu2 %v2390_v50  ;;  %1758 = vmatpush.bf16.msra.mxu3 %v2454_v30  ;;  %v2590_v50 = vor.u32 %v2882_v27, %v2589_v26  ;;  %v2413_v30 = vld [vmem:[#allocation11 + $0x190] sm:$0xf] }
  0x6a   :  { %v2414_v35 = vor.u32 %v2838_v31, %v2413_v30 }
  0x6b   :  { %1720 = vmatpush.bf16.msra.mxu0 %v2254_v22  ;;  %1733 = vmatpush.bf16.msra.mxu1 %v2318_v25  ;;  %v2525_v22 = vld [vmem:[#allocation11 + $0x270] sm:$0xf] }
  0x6c   :  { %v2526_v25 = vor.u32 %v2866_v23, %v2525_v22 }
  0x6d   :  { %1746 = vmatpush.bf16.msra.mxu2 %v2382_v40  ;;  %1759 = vmatpush.bf16.msra.mxu3 %v2446_v42  ;;  %v2880_v40 = vld [vmem:[#allocation11 + $0x2e4] sm:$0xf0] }
  0x6e   :  { %v2820_v42 = vld [vmem:[#allocation11 + $0x104] sm:$0xf0]  ;;  %v2582_v43 = vor.u32 %v2880_v40, %v2581_v38 }
  0x6f   :  { %1721 = vmatpush.bf16.msra.mxu0 %v2246_v34  ;;  %1734 = vmatpush.bf16.msra.mxu1 %v2310_v36  ;;  %v2350_v34 = vor.u32 %v2822_v29, %v2349_v28  ;;  %v2517_v36 = vld [vmem:[#allocation11 + $0x260] sm:$0xf]  ;;  %v2342_v44 = vor.u32 %v2820_v42, %v2341_v41 }
  0x70   :  { %v2518_v39 = vor.u32 %v2864_v37, %v2517_v36 }
  0x71   :  { %1747 = vmatpush.bf16.msra.mxu2 %v2374_v53  ;;  %1760 = vmatpush.bf16.msra.mxu3 %v2438_v55  ;;  %v2914_v53 = vld [vmem:[#allocation11 + $0x3f4] sm:$0xf0] }
  0x72   :  { %v2718_v60 = vor.u32 %v2914_v53, %v2717_v52 }
  0x73   :  { %1722 = vmatpush.bf16.msra.mxu0 %v2238_v46  ;;  %1735 = vmatpush.bf16.msra.mxu1 %v2302_v48  ;;  %v2836_v46 = vld [vmem:[#allocation11 + $0x184] sm:$0xf0] }
  0x74   :  { %v2406_v49 = vor.u32 %v2836_v46, %v2405_v45 }
  0x75   :  { %1748 = vmatpush.bf16.msra.mxu2 %v2366_v1  ;;  %1761 = vmatpush.bf16.msra.mxu3 %v2430_v3  ;;  %v2645_v3 = vld [vmem:[#allocation11 + $0x360] sm:$0xf] }
  0x76   :  { %v2646_v8 = vor.u32 %v2896_v4, %v2645_v3 }
  0x77   :  { %1723 = vmatpush.bf16.msra.mxu0 %v2230_v59  ;;  %1736 = vmatpush.bf16.msra.mxu1 %v2294_v61  ;;  %v2510_v61 = vor.u32 %v2862_v58, %v2509_v57 }
  0x79   :  { %1749 = vmatpush.bf16.msra.mxu2 %v2358_v14  ;;  %1762 = vmatpush.bf16.msra.mxu3 %v2422_v16  ;;  %v199_v14 = vperm.slane %v3235_v13, 3 }
  0x7b   :  { %1724 = vmatpush.bf16.msra.mxu0 %v2222_v7  ;;  %1737 = vmatpush.bf16.msra.mxu1 %v2286_v9  ;;  %v198_v7 = vperm.slane %v3235_v13, 2  ;;  %v2709_v9 = vld [vmem:[#allocation11 + $0x3e0] sm:$0xf] }
  0x7c   :  { %v2710_v15 = vor.u32 %v2912_v10, %v2709_v9 }
  0x7d   :  { %1750 = vmatpush.bf16.msra.mxu2 %v2350_v34  ;;  %1763 = vmatpush.bf16.msra.mxu3 %v2414_v35 }
  0x7f   :  { %1725 = vmatpush.bf16.msra.mxu0 %v2214_v20  ;;  %1738 = vmatpush.bf16.msra.mxu1 %v2278_v24 }
  0x81   :  { %1751 = vmatpush.bf16.msra.mxu2 %v2342_v44  ;;  %1764 = vmatpush.bf16.msra.mxu3 %v2406_v49 }
  0x83   :  { %1770 = vmatpush.bf16.msrb.mxu0 %v2526_v25  ;;  %1783 = vmatpush.bf16.msrb.mxu1 %v2590_v50 }
  0x85   :  { %1796 = vmatpush.bf16.msrb.mxu2 %v2654_v56  ;;  %1809 = vmatpush.bf16.msrb.mxu3 %v2718_v60 }
  0x87   :  { %1771 = vmatpush.bf16.msrb.mxu0 %v2518_v39  ;;  %1784 = vmatpush.bf16.msrb.mxu1 %v2582_v43 }
  0x89   :  { %1797 = vmatpush.bf16.msrb.mxu2 %v2646_v8  ;;  %1810 = vmatpush.bf16.msrb.mxu3 %v2710_v15 }
  0x8b   :  { %1772 = vmatpush.bf16.msrb.mxu0 %v2510_v61  ;;  %1785 = vmatpush.bf16.msrb.mxu1 %v2574_v2  ;;  %v2860_v2 = vld [vmem:[#allocation11 + $0x244] sm:$0xf0] }
  0xbf   :  { %v541_v48 = vpop.f32.mrf.mxu0  ;;  %v554_v55 = vpop.f32.mrf.mxu1 }
  0xc0   :  { %v3239_v54 = vadd.f32 %v541_v48, %v196_v32  ;;  %v3241_v59 = vadd.f32 %v554_v55, %v197_v33 }
  0xc2   :  { %v636_v0 = vrot.slane %v3239_v54, 4  ;;  %v684_v1 = vmul.f32 %v3239_v54, %v3239_v54  ;;  %v642_v5 = vrot.slane %v3241_v59, 4  ;;  %v685_v6 = vmul.f32 %v3241_v59, %v3241_v59 }
  0xc4   :  { %v637_v11 = vadd.f32 %v636_v0, %v3239_v54  ;;  %v692_v12 = vrot.slane %v684_v1, 4  ;;  %v643_v16 = vadd.f32 %v642_v5, %v3241_v59  ;;  %v698_v17 = vrot.slane %v685_v6, 4 }
  0xc6   :  { %v638_v18 = vrot.slane %v637_v11, 2  ;;  %v693_v19 = vadd.f32 %v692_v12, %v684_v1  ;;  %v644_v21 = vrot.slane %v643_v16, 2  ;;  %v699_v22 = vadd.f32 %v698_v17, %v685_v6  ;;  %v2501_v1 = vld [vmem:[#allocation11 + $0x240] sm:$0xf]  ;;  %v2637_v12 = vld [vmem:[#allocation11 + $0x350] sm:$0xf] }
  0xc7   :  { %v580_v24 = vpop.f32.mrf.mxu3  ;;  %v543_v25 = vpop.f32.mrf.mxu0  ;;  %v2565_v6 = vld [vmem:[#allocation11 + $0x2c0] sm:$0xf]  ;;  %v2502_v17 = vor.u32 %v2860_v2, %v2501_v1  ;;  %v2477_v1 = vld [vmem:[#allocation11 + $0x210] sm:$0xf] }
  0xc8   :  { %v567_v20 = vpop.f32.mrf.mxu2  ;;  %v639_v26 = vadd.f32 %v638_v18, %v637_v11  ;;  %v694_v27 = vrot.slane %v693_v19, 2  ;;  %v3255_v28 = vadd.f32 %v580_v24, %v199_v14  ;;  %v556_v50 = vpop.f32.mrf.mxu1  ;;  %v645_v29 = vadd.f32 %v644_v21, %v643_v16  ;;  %v2894_v14 = vld [vmem:[#allocation11 + $0x354] sm:$0xf0]  ;;  %v2701_v18 = vld [vmem:[#allocation11 + $0x3d0] sm:$0xf] }
  0xc9   :  { %v3253_v23 = vadd.f32 %v567_v20, %v198_v7  ;;  %v700_v30 = vrot.slane %v699_v22, 2  ;;  %v2876_v7 = vld [vmem:[#allocation11 + $0x2c4] sm:$0xf0]  ;;  %v2493_v25 = vld [vmem:[#allocation11 + $0x230] sm:$0xf]  ;;  %1773 = vmatpush.bf16.msrb.mxu0 %v2502_v17 }
  0xca   :  { %v640_v33 = vrot.slane %v639_v26, 1  ;;  %v695_v34 = vadd.f32 %v694_v27, %v693_v19  ;;  %v654_v35 = vrot.slane %v3255_v28, 4  ;;  %v687_v36 = vmul.f32 %v3255_v28, %v3255_v28  ;;  %v2910_v19 = vld [vmem:[#allocation11 + $0x3d4] sm:$0xf0]  ;;  %v2557_v27 = vld [vmem:[#allocation11 + $0x2b0] sm:$0xf] }
  0xcb   :  { %v648_v31 = vrot.slane %v3253_v23, 4  ;;  %v686_v32 = vmul.f32 %v3253_v23, %v3253_v23  ;;  %v646_v37 = vrot.slane %v645_v29, 1  ;;  %v701_v38 = vadd.f32 %v700_v30, %v699_v22  ;;  %v2874_v50 = vld [vmem:[#allocation11 + $0x2b4] sm:$0xf0] }
  0xcc   :  { %v641_v41 = vadd.f32 %v640_v33, %v639_v26  ;;  %v696_v42 = vrot.slane %v695_v34, 1  ;;  %v655_v43 = vadd.f32 %v654_v35, %v3255_v28  ;;  %v710_v44 = vrot.slane %v687_v36, 4  ;;  %v2858_v26 = vld [vmem:[#allocation11 + $0x234] sm:$0xf0]  ;;  %v2629_v33 = vld [vmem:[#allocation11 + $0x340] sm:$0xf] }
  0xcd   :  { %v649_v39 = vadd.f32 %v648_v31, %v3253_v23  ;;  %v704_v40 = vrot.slane %v686_v32, 4  ;;  %v647_v45 = vadd.f32 %v646_v37, %v645_v29  ;;  %v702_v46 = vrot.slane %v701_v38, 1  ;;  %v2892_v37 = vld [vmem:[#allocation11 + $0x344] sm:$0xf0] }
  0xce   :  { %v697_v49 = vadd.f32 %v696_v42, %v695_v34  ;;  %v3265_v51 = vmul.f32 0.125, %v641_v41  ;;  %v656_v52 = vrot.slane %v655_v43, 2  ;;  %v711_v53 = vadd.f32 %v710_v44, %v687_v36  ;;  %v2485_v41 = vld [vmem:[#allocation11 + $0x220] sm:$0xf]  ;;  %v2856_v42 = vld [vmem:[#allocation11 + $0x224] sm:$0xf0] }
  0xcf   :  { %v650_v47 = vrot.slane %v649_v39, 2  ;;  %v705_v48 = vadd.f32 %v704_v40, %v686_v32  ;;  %v703_v56 = vadd.f32 %v702_v46, %v701_v38  ;;  %v3267_v57 = vmul.f32 0.125, %v647_v45  ;;  %v582_v61 = vpop.f32.mrf.mxu3  ;;  %v2693_v38 = vld [vmem:[#allocation11 + $0x3c0] sm:$0xf]  ;;  %v2908_v40 = vld [vmem:[#allocation11 + $0x3c4] sm:$0xf0] }
  0xd0   :  { %v569_v55 = vpop.f32.mrf.mxu2  ;;  %v748_v62 = vmul.f32 0.125, %v697_v49  ;;  %v756_v63 = vmul.f32 %v3265_v51, %v3265_v51  ;;  %v657_v0 = vadd.f32 %v656_v52, %v655_v43  ;;  %v712_v11 = vrot.slane %v711_v53, 2 }
  0xd1   :  { %v651_v58 = vadd.f32 %v650_v47, %v649_v39  ;;  %v706_v60 = vrot.slane %v705_v48, 2  ;;  %v749_v3 = vmul.f32 0.125, %v703_v56  ;;  %v757_v4 = vmul.f32 %v3267_v57, %v3267_v57  ;;  %v2549_v47 = vld [vmem:[#allocation11 + $0x2a0] sm:$0xf]  ;;  %v2621_v55 = vld [vmem:[#allocation11 + $0x330] sm:$0xf] }
  0xd2   :  { %v764_v8 = vsub.f32 %v748_v62, %v756_v63  ;;  %v658_v10 = vrot.slane %v657_v0, 1  ;;  %v713_v24 = vadd.f32 %v712_v11, %v711_v53  ;;  %v2566_v31 = vor.u32 %v2876_v7, %v2565_v6  ;;  %v2890_v56 = vld [vmem:[#allocation11 + $0x334] sm:$0xf0] }
  0xd3   :  { %v652_v5 = vrot.slane %v651_v58, 1  ;;  %v707_v9 = vadd.f32 %v706_v60, %v705_v48  ;;  %v765_v15 = vsub.f32 %v749_v3, %v757_v4  ;;  %v2638_v32 = vor.u32 %v2894_v14, %v2637_v12  ;;  %v2872_v48 = vld [vmem:[#allocation11 + $0x2a4] sm:$0xf0]  ;;  %v2854_v4 = vld [vmem:[#allocation11 + $0x214] sm:$0xf0] }
  0xd4   :  { %v3273_v20 = vadd.f32 1e-05, %v764_v8  ;;  %v659_v22 = vadd.f32 %v658_v10, %v657_v0  ;;  %v714_v35 = vrot.slane %v713_v24, 1  ;;  %v200_v36 = vperm.slane %v3235_v13, 4  ;;  %1786 = vmatpush.bf16.msrb.mxu1 %v2566_v31  ;;  %v2906_v0 = vld [vmem:[#allocation11 + $0x3b4] sm:$0xf0] }
  0xd5   :  { %v653_v16 = vadd.f32 %v652_v5, %v651_v58  ;;  %v708_v21 = vrot.slane %v707_v9, 1  ;;  %v3275_v29 = vadd.f32 1e-05, %v765_v15  ;;  %1798 = vmatpush.bf16.msrb.mxu2 %v2638_v32  ;;  %v2702_v46 = vor.u32 %v2910_v19, %v2701_v18  ;;  %v2685_v58 = vld [vmem:[#allocation11 + $0x3b0] sm:$0xf] }
  0xd6   :  { %2927 = vrsqrt.f32 %v3273_v20  ;;  %v715_v44 = vadd.f32 %v714_v35, %v713_v24  ;;  %v3284_v45 = vmul.f32 0.125, %v659_v22  ;;  %v2494_v49 = vor.u32 %v2858_v26, %v2493_v25  ;;  %v2541_v5 = vld [vmem:[#allocation11 + $0x290] sm:$0xf]  ;;  %v2870_v6 = vld [vmem:[#allocation11 + $0x294] sm:$0xf0] }
  0xd7   :  { %v3277_v30 = vmul.f32 0.125, %v653_v16  ;;  %v709_v34 = vadd.f32 %v708_v21, %v707_v9  ;;  %2929 = vrsqrt.f32 %v3275_v29  ;;  %v2558_v52 = vor.u32 %v2874_v50, %v2557_v27  ;;  %1811 = vmatpush.bf16.msrb.mxu3 %v2702_v46  ;;  %v2613_v21 = vld [vmem:[#allocation11 + $0x320] sm:$0xf]  ;;  %v2888_v22 = vld [vmem:[#allocation11 + $0x324] sm:$0xf0] }
  0xd8   :  { %v2630_v53 = vor.u32 %v2892_v37, %v2629_v33  ;;  %v751_v61 = vmul.f32 0.125, %v715_v44  ;;  %v759_v62 = vmul.f32 %v3284_v45, %v3284_v45  ;;  %v2694_v63 = vor.u32 %v2908_v40, %v2693_v38  ;;  %1774 = vmatpush.bf16.msrb.mxu0 %v2494_v49  ;;  %v2677_v27 = vld [vmem:[#allocation11 + $0x3a0] sm:$0xf]  ;;  %v2904_v50 = vld [vmem:[#allocation11 + $0x3a4] sm:$0xf0] }
  0xd9   :  { %v758_v39 = vmul.f32 %v3277_v30, %v3277_v30  ;;  %v750_v43 = vmul.f32 0.125, %v709_v34  ;;  %1787 = vmatpush.bf16.msrb.mxu1 %v2558_v52  ;;  %v2486_v2 = vor.u32 %v2856_v42, %v2485_v41  ;;  %v2550_v3 = vor.u32 %v2872_v48, %v2549_v47 }
  0xda   :  { %v767_v9 = vsub.f32 %v751_v61, %v759_v62  ;;  %v201_v11 = vperm.slane %v3235_v13, 5  ;;  %1799 = vmatpush.bf16.msrb.mxu2 %v2630_v53  ;;  %v2622_v12 = vor.u32 %v2890_v56, %v2621_v55  ;;  %v202_v18 = vperm.slane %v3235_v13, 6  ;;  %v3327_v62 = vld [vmem:[#allocation8] sm:$0xff] }
  0xdb   :  { %v766_v60 = vsub.f32 %v750_v43, %v758_v39  ;;  %v2686_v19 = vor.u32 %v2906_v0, %v2685_v58  ;;  %1812 = vmatpush.bf16.msrb.mxu3 %v2694_v63  ;;  %v2478_v25 = vor.u32 %v2854_v4, %v2477_v1  ;;  %v2542_v26 = vor.u32 %v2870_v6, %v2541_v5  ;;  %v3333_v4 = vld [vmem:[#allocation10] sm:$0xff] }
  0xdc   :  { %v3288_v7 = vpop.eup %2927  ;;  %v3304_v32 = vadd.f32 1e-05, %v767_v9  ;;  %1775 = vmatpush.bf16.msrb.mxu0 %v2486_v2  ;;  %v772_v35 = vsub.f32 %v3239_v54, %v3265_v51  ;;  %v2614_v38 = vor.u32 %v2888_v22, %v2613_v21  ;;  %v2678_v41 = vor.u32 %v2904_v50, %v2677_v27 }
  0xdd   :  { %v3290_v8 = vadd.f32 1e-05, %v766_v60  ;;  %v3293_v14 = vpop.eup %2929  ;;  %v789_v15 = vmul.f32 %v3288_v7, %v3273_v20  ;;  %1788 = vmatpush.bf16.msrb.mxu1 %v2550_v3  ;;  %vm794_vm0 = vweird.f32 %v3273_v20  ;;  %v773_v47 = vsub.f32 %v3241_v59, %v3267_v57 }
  0xde   :  { %v799_v24 = vmul.f32 %v3293_v14, %v3275_v29  ;;  %1800 = vmatpush.bf16.msrb.mxu2 %v2622_v12  ;;  %v203_v52 = vperm.slane %v3235_v13, 7  ;;  %vm804_vm1 = vweird.f32 %v3275_v29  ;;  %v774_v0 = vsub.f32 %v3253_v23, %v3277_v30 }
  0xdf   :  { %v593_v10 = vpop.f32.mrf.mxu0  ;;  %v606_v17 = vpop.f32.mrf.mxu1  ;;  %2931 = vrsqrt.f32 %v3290_v8  ;;  %v790_v31 = vmul.f32 %v3288_v7, %v789_v15  ;;  %1813 = vmatpush.bf16.msrb.mxu3 %v2686_v19  ;;  %vm795_vm2 = vweird.f32 %v3288_v7  ;;  %vm805_vm3 = vweird.f32 %v3293_v14 }
  0xe0   :  { %v3297_v16 = vadd.f32 %v593_v10, %v200_v36  ;;  %v800_v36 = vmul.f32 %v3293_v14, %v799_v24  ;;  %v3312_v37 = vadd.f32 %v606_v17, %v201_v11  ;;  %2933 = vrsqrt.f32 %v3304_v32  ;;  %1776 = vmatpush.bf16.msrb.mxu0 %v2478_v25  ;;  %vm3359_vm4 = vmor %vm794_vm0, %vm795_vm2 }
  0xe1   :  { %v791_v39 = vmul.f32 0.5, %v790_v31  ;;  %1789 = vmatpush.bf16.msrb.mxu1 %v2542_v26  ;;  %v878_v17 = vperm.slane %v3327_v62, 0  ;;  %v904_v22 = vperm.slane %v3333_v4, 0  ;;  %v879_v27 = vperm.slane %v3327_v62, 1  ;;  %vm3371_vm5 = vmor %vm804_vm1, %vm805_vm3 }
  0xe2   :  { %v660_v33 = vrot.slane %v3297_v16, 4  ;;  %v688_v34 = vmul.f32 %v3297_v16, %v3297_v16  ;;  %v801_v42 = vmul.f32 0.5, %v800_v36  ;;  %v666_v44 = vrot.slane %v3312_v37, 4  ;;  %1801 = vmatpush.bf16.msrb.mxu2 %v2614_v38 }
  0xe3   :  { %v689_v46 = vmul.f32 %v3312_v37, %v3312_v37  ;;  %v792_v63 = vsub.f32 1.5, %v791_v39  ;;  %1814 = vmatpush.bf16.msrb.mxu3 %v2678_v41  ;;  %vm814_vm7 = vweird.f32 %v3290_v8  ;;  %vm824_vm8 = vweird.f32 %v3304_v32  ;;  %v2533_v41 = vld [vmem:[#allocation11 + $0x280] sm:$0xf] }
  0xe4   :  { %v661_v40 = vadd.f32 %v660_v33, %v3297_v16  ;;  %v716_v43 = vrot.slane %v688_v34, 4  ;;  %v667_v56 = vadd.f32 %v666_v44, %v3312_v37  ;;  %v802_v5 = vsub.f32 1.5, %v801_v42 }
  0xe5   :  { %v3323_v53 = vpop.eup %2931  ;;  %v722_v58 = vrot.slane %v689_v46, 4  ;;  %v793_v24 = vmul.f32 %v3288_v7, %v792_v63 }
  0xe6   :  { %v662_v48 = vrot.slane %v661_v40, 2  ;;  %v717_v55 = vadd.f32 %v716_v43, %v688_v34  ;;  %v809_v1 = vmul.f32 %v3323_v53, %v3290_v8  ;;  %v668_v9 = vrot.slane %v667_v56, 2  ;;  %v3335_v11 = vpop.eup %2933 }
  0xe7   :  { %v619_v49 = vpop.f32.mrf.mxu2  ;;  %v632_v60 = vpop.f32.mrf.mxu3  ;;  %v723_v10 = vadd.f32 %v722_v58, %v689_v46  ;;  %v819_v21 = vmul.f32 %v3335_v11, %v3304_v32  ;;  %vm815_vm6 = vweird.f32 %v3323_v53  ;;  %vm825_vm9 = vweird.f32 %v3335_v11 }
  0xe8   :  { %v595_v61 = vpop.f32.mrf.mxu0  ;;  %v663_v2 = vadd.f32 %v662_v48, %v661_v40  ;;  %v608_v3 = vpop.f32.mrf.mxu1  ;;  %v718_v6 = vrot.slane %v717_v55, 2  ;;  %v3338_v15 = vadd.f32 %v619_v49, %v202_v18  ;;  %v810_v19 = vmul.f32 %v3323_v53, %v809_v1  ;;  %vm3421_vm10 = vmor %vm814_vm7, %vm815_vm6 }
  0xe9   :  { %v803_v18 = vmul.f32 %v3293_v14, %v802_v5  ;;  %v669_v50 = vadd.f32 %v668_v9, %v667_v56  ;;  %v724_v31 = vrot.slane %v723_v10, 2  ;;  %v820_v34 = vmul.f32 %v3335_v11, %v819_v21  ;;  %vm3439_vm11 = vmor %vm824_vm8, %vm825_vm9 }
  0xea   :  { %v664_v12 = vrot.slane %v663_v2, 1  ;;  %v719_v26 = vadd.f32 %v718_v6, %v717_v55  ;;  %v672_v33 = vrot.slane %v3338_v15, 4  ;;  %v690_v39 = vmul.f32 %v3338_v15, %v3338_v15 }
  0xeb   :  { %v811_v42 = vmul.f32 0.5, %v810_v19  ;;  %v670_v43 = vrot.slane %v669_v50, 1  ;;  %v725_v44 = vadd.f32 %v724_v31, %v723_v10  ;;  %v797_v49 = vsel %vm3359_vm4, %v3288_v7, %v793_v24  ;;  %v2469_v31 = vld [vmem:[#allocation11 + $0x200] sm:$0xf] }
  0xec   :  { %v665_v25 = vadd.f32 %v664_v12, %v663_v2  ;;  %v720_v36 = vrot.slane %v719_v26, 1  ;;  %v673_v46 = vadd.f32 %v672_v33, %v3338_v15  ;;  %v807_v58 = vsel %vm3371_vm5, %v3293_v14, %v803_v18  ;;  %v2852_v33 = vld [vmem:[#allocation11 + $0x204] sm:$0xf0] }
  0xed   :  { %v671_v61 = vadd.f32 %v670_v43, %v669_v50  ;;  %v726_v7 = vrot.slane %v725_v44, 1  ;;  %v821_v29 = vmul.f32 0.5, %v820_v34  ;;  %v728_v2 = vrot.slane %v690_v39, 4 }
  0xee   :  { %v3351_v38 = vmul.f32 0.125, %v665_v25  ;;  %v721_v55 = vadd.f32 %v720_v36, %v719_v26  ;;  %v674_v63 = vrot.slane %v673_v46, 2  ;;  %v3384_v3 = vadd.f32 %v632_v60, %v203_v52 }
  0xef   :  { %v621_v40 = vpop.f32.mrf.mxu2  ;;  %v634_v48 = vpop.f32.mrf.mxu3  ;;  %v868_v5 = vmul.f32 %v797_v49, %v772_v35  ;;  %v812_v6 = vsub.f32 1.5, %v811_v42  ;;  %v727_v9 = vadd.f32 %v726_v7, %v725_v44  ;;  %v3389_v10 = vmul.f32 0.125, %v671_v61  ;;  %v2817_v7 = vld [vmem:[#allocation11 + $0xf4] sm:$0xf] }
  0xf0   :  { %v760_v56 = vmul.f32 %v3351_v38, %v3351_v38  ;;  %v752_v1 = vmul.f32 0.125, %v721_v55  ;;  %v675_v12 = vadd.f32 %v674_v63, %v673_v46  ;;  %v729_v19 = vadd.f32 %v728_v2, %v690_v39  ;;  %v2868_v46 = vld [vmem:[#allocation11 + $0x284] sm:$0xf0]  ;;  %v2801_v55 = vld [vmem:[#allocation11 + $0x74] sm:$0xf] }
  0xf1   :  { %v678_v21 = vrot.slane %v3384_v3, 4  ;;  %v869_v24 = vmul.f32 %v807_v58, %v773_v47  ;;  %v753_v13 = vmul.f32 0.125, %v727_v9  ;;  %v761_v54 = vmul.f32 %v3389_v10, %v3389_v10  ;;  %v2335_v63 = vld [vmem:[#allocation11 + $0xf8] sm:$0xf0]  ;;  %v2886_v9 = vld [vmem:[#allocation11 + $0x314] sm:$0xf0] }
  0xf2   :  { %v768_v14 = vsub.f32 %v752_v1, %v760_v56  ;;  %v822_v51 = vsub.f32 1.5, %v821_v29  ;;  %v676_v52 = vrot.slane %v675_v12, 1  ;;  %v730_v60 = vrot.slane %v729_v19, 2  ;;  %v2271_v56 = vld [vmem:[#allocation11 + $0x78] sm:$0xf0] }
  0xf3   :  { %v769_v25 = vsub.f32 %v753_v13, %v761_v54  ;;  %v679_v26 = vadd.f32 %v678_v21, %v3384_v3  ;;  %v691_v59 = vmul.f32 %v3384_v3, %v3384_v3  ;;  %v894_v57 = vmul.f32 %v878_v17, %v868_v5  ;;  %v2669_v13 = vld [vmem:[#allocation11 + $0x390] sm:$0xf]  ;;  %v2902_v54 = vld [vmem:[#allocation11 + $0x394] sm:$0xf0] }
  0xf4   :  { %v3399_v35 = vadd.f32 1e-05, %v768_v14  ;;  %v3405_v47 = vmul.f32 %v3323_v53, %v812_v6  ;;  %v677_v18 = vadd.f32 %v676_v52, %v675_v12  ;;  %v731_v50 = vadd.f32 %v730_v60, %v729_v19  ;;  %v2605_v6 = vld [vmem:[#allocation11 + $0x310] sm:$0xf] }
  0xf5   :  { %v3408_v34 = vadd.f32 1e-05, %v769_v25  ;;  %v680_v36 = vrot.slane %v679_v26, 2  ;;  %v734_v39 = vrot.slane %v691_v59, 4  ;;  %v920_v40 = vadd.f32 %v904_v22, %v894_v57 }
  0xf6   :  { %2935 = vrsqrt.f32 %v3399_v35  ;;  %v732_v42 = vrot.slane %v731_v50, 1  ;;  %v3412_v43 = vmul.f32 0.125, %v677_v18  ;;  %v895_v17 = vmul.f32 %v879_v27, %v869_v24 }
  0xf7   :  { %v905_v44 = vperm.slane %v3333_v4, 1  ;;  %v823_v22 = vmul.f32 %v3335_v11, %v822_v51  ;;  %2937 = vrsqrt.f32 %v3408_v34  ;;  %v681_v49 = vadd.f32 %v680_v36, %v679_v26  ;;  %v2263_v36 = vld [vmem:[#allocation11 + $0x68] sm:$0xf0] }
  0xf8   :  { %v735_v20 = vadd.f32 %v734_v39, %v691_v59  ;;  %v817_v27 = vsel %vm3421_vm10, %v3323_v53, %v3405_v47  ;;  %v733_v58 = vadd.f32 %v732_v42, %v731_v50  ;;  %v762_v8 = vmul.f32 %v3412_v43, %v3412_v43  ;;  %v2255_v53 = vld [vmem:[#allocation11 + $0x58] sm:$0xf0] }
  0xf9   :  { %v928_v61 = vmax.f32 %v920_v40, 0.0  ;;  %v682_v29 = vrot.slane %v681_v49, 1  ;;  %v921_v2 = vadd.f32 %v905_v44, %v895_v17  ;;  %v2470_v5 = vor.u32 %v2852_v33, %v2469_v31  ;;  %v2799_v33 = vld [vmem:[#allocation11 + $0x64] sm:$0xf]  ;;  %v2327_v44 = vld [vmem:[#allocation11 + $0xe8] sm:$0xf0] }
  0xfa   :  { %v736_v1 = vrot.slane %v735_v20, 2  ;;  %v754_v12 = vmul.f32 0.125, %v733_v58  ;;  %v2534_v21 = vor.u32 %v2868_v46, %v2533_v41  ;;  %v2274_v24 = vor.u32 %v2801_v55, %v2271_v56  ;;  %v2815_v17 = vld [vmem:[#allocation11 + $0xe4] sm:$0xf]  ;;  %v2597_v55 = vld [vmem:[#allocation11 + $0x300] sm:$0xf] }
  0xfb   :  { %v3443_v19 = vpack.c.bf16 %v928_v61, %v928_v61  ;;  %v827_v51 = vsel %vm3439_vm11, %v3335_v11, %v823_v22  ;;  %v683_v60 = vadd.f32 %v682_v29, %v681_v49  ;;  %1777 = vmatpush.bf16.msrb.mxu0 %v2470_v5  ;;  %v929_v26 = vmax.f32 %v921_v2, 0.0  ;;  %v2884_v56 = vld [vmem:[#allocation11 + $0x304] sm:$0xf0]  ;;  %v2661_v58 = vld [vmem:[#allocation11 + $0x380] sm:$0xf] }
  0xfc   :  { %v3433_v14 = vpop.eup %2935  ;;  %v737_v32 = vadd.f32 %v736_v1, %v735_v20  ;;  %v770_v25 = vsub.f32 %v754_v12, %v762_v8  ;;  %1790 = vmatpush.bf16.msrb.mxu1 %v2534_v21  ;;  %v2338_v59 = vor.u32 %v2817_v7, %v2335_v63  ;;  %v2606_v57 = vor.u32 %v2886_v9, %v2605_v6  ;;  %v3476_v6 = vld [vmem:[#allocation11 + $0x174] sm:$0xf] }
  0xfd   :  { %v829_v52 = vmul.f32 %v3433_v14, %v3399_v35  ;;  %1726 = vmatmul.bf16.vlgmr.msra.gmra.mxu0 %v3443_v19  ;;  %v3451_v47 = vpop.eup %2937  ;;  %v3454_v31 = vmul.f32 0.125, %v683_v60  ;;  %v2670_v11 = vor.u32 %v2902_v54, %v2669_v13  ;;  %v775_v39 = vsub.f32 %v3255_v28, %v3284_v45  ;;  %v2797_v9 = vld [vmem:[#allocation11 + $0x54] sm:$0xf]  ;;  %v2399_v13 = vld [vmem:[#allocation11 + $0x178] sm:$0xf0] }
  0xfe   :  { %v738_v50 = vrot.slane %v737_v32, 1  ;;  %v839_v40 = vmul.f32 %v3451_v47, %v3408_v34  ;;  %v3460_v41 = vadd.f32 1e-05, %v770_v25  ;;  %v3462_v42 = vpack.c.bf16 %v929_v26, %v929_v26  ;;  %1802 = vmatpush.bf16.msrb.mxu2 %v2606_v57  ;;  %v2849_v54 = vld [vmem:[#allocation11 + $0x1f4] sm:$0xf] }
  0xff   :  { %v830_v18 = vmul.f32 %v3433_v14, %v829_v52  ;;  %1822 = vmatpush.bf16.msra.mxu0 %v2274_v24  ;;  %v870_v46 = vmul.f32 %v817_v27, %v774_v0  ;;  %v763_v49 = vmul.f32 %v3454_v31, %v3454_v31  ;;  %1815 = vmatpush.bf16.msrb.mxu3 %v2670_v11  ;;  %v880_v0 = vperm.slane %v3327_v62, 2  ;;  %v2900_v27 = vld [vmem:[#allocation11 + $0x384] sm:$0xf0]  ;;  %v2319_v25 = vld [vmem:[#allocation11 + $0xd8] sm:$0xf0] }
 0x100   :  { %v739_v22 = vadd.f32 %v738_v50, %v737_v32  ;;  %v871_v28 = vmul.f32 %v827_v51, %v775_v39  ;;  %v840_v45 = vmul.f32 %v3451_v47, %v839_v40  ;;  %2939 = vrsqrt.f32 %v3460_v41  ;;  %1739 = vmatmul.bf16.vlgmr.msra.gmra.mxu1 %v3462_v42  ;;  %v2813_v32 = vld [vmem:[#allocation11 + $0xd4] sm:$0xf]  ;;  %v2795_v11 = vld [vmem:[#allocation11 + $0x44] sm:$0xf] }
 0x101   :  { %v831_v48 = vmul.f32 0.5, %v830_v18  ;;  %v2266_v20 = vor.u32 %v2799_v33, %v2263_v36  ;;  %1835 = vmatpush.bf16.msra.mxu1 %v2338_v59  ;;  %v2330_v30 = vor.u32 %v2815_v17, %v2327_v44  ;;  %v906_v7 = vperm.slane %v3333_v4, 2  ;;  %v2463_v18 = vld [vmem:[#allocation11 + $0x1f8] sm:$0xf0]  ;;  %v2247_v33 = vld [vmem:[#allocation11 + $0x48] sm:$0xf0] }
 0x102   :  { %v755_v23 = vmul.f32 0.125, %v739_v22  ;;  %v841_v61 = vmul.f32 0.5, %v840_v45  ;;  %v881_v63 = vperm.slane %v3327_v62, 3  ;;  %v907_v29 = vperm.slane %v3333_v4, 3  ;;  %v2811_v40 = vld [vmem:[#allocation11 + $0xc4] sm:$0xf] }
 0x103   :  { %v832_v8 = vsub.f32 1.5, %v831_v48  ;;  %1823 = vmatpush.bf16.msra.mxu0 %v2266_v20  ;;  %v896_v2 = vmul.f32 %v880_v0, %v870_v46  ;;  %v2598_v5 = vor.u32 %v2884_v56, %v2597_v55  ;;  %vm835_vm12 = vweird.f32 %v3433_v14  ;;  %v2311_v17 = vld [vmem:[#allocation11 + $0xc8] sm:$0xf0]  ;;  %v2831_v45 = vld [vmem:[#allocation11 + $0x164] sm:$0xf] }
 0x104   :  { %v771_v1 = vsub.f32 %v755_v23, %v763_v49  ;;  %v842_v12 = vsub.f32 1.5, %v841_v61  ;;  %v897_v21 = vmul.f32 %v881_v63, %v871_v28  ;;  %v2662_v24 = vor.u32 %v2900_v27, %v2661_v58  ;;  %v2391_v20 = vld [vmem:[#allocation11 + $0x168] sm:$0xf0]  ;;  %v2847_v55 = vld [vmem:[#allocation11 + $0x1e4] sm:$0xf] }
 0x105   :  { %v833_v51 = vmul.f32 %v3433_v14, %v832_v8  ;;  %vm845_vm13 = vweird.f32 %v3451_v47  ;;  %1836 = vmatpush.bf16.msra.mxu1 %v2330_v30  ;;  %v922_v60 = vadd.f32 %v906_v7, %v896_v2  ;;  %1803 = vmatpush.bf16.msrb.mxu2 %v2598_v5  ;;  %vm834_vm14 = vweird.f32 %v3399_v35  ;;  %v2455_v8 = vld [vmem:[#allocation11 + $0x1e8] sm:$0xf0]  ;;  %v2793_v0 = vld [vmem:[#allocation11 + $0x34] sm:$0xf]  ;;  %v2303_v7 = vld [vmem:[#allocation11 + $0xb8] sm:$0xf0] }
 0x106   :  { %v3481_v52 = vadd.f32 1e-05, %v771_v1  ;;  %v3483_v26 = vpop.eup %2939  ;;  %v843_v59 = vmul.f32 %v3451_v47, %v842_v12  ;;  %v923_v57 = vadd.f32 %v907_v29, %v897_v21  ;;  %1816 = vmatpush.bf16.msrb.mxu3 %v2662_v24  ;;  %v2258_v50 = vor.u32 %v2797_v9, %v2255_v53  ;;  %vm3491_vm15 = vmor %vm834_vm14, %vm835_vm12  ;;  %v2809_v61 = vld [vmem:[#allocation11 + $0xb4] sm:$0xf]  ;;  %v2383_v1 = vld [vmem:[#allocation11 + $0x158] sm:$0xf0] }
 0x107   :  { %v776_v36 = vsub.f32 %v3297_v16, %v3351_v38  ;;  %vm844_vm0 = vweird.f32 %v3408_v34  ;;  %v849_v35 = vmul.f32 %v3483_v26, %v3460_v41  ;;  %v930_v16 = vmax.f32 %v922_v60, 0.0  ;;  %v2829_v29 = vld [vmem:[#allocation11 + $0x154] sm:$0xf]  ;;  %v2447_v21 = vld [vmem:[#allocation11 + $0x1d8] sm:$0xf0] }
 0x108   :  { %2941 = vrsqrt.f32 %v3481_v52  ;;  %vm3501_vm1 = vmor %vm844_vm0, %vm845_vm13  ;;  %v931_v38 = vmax.f32 %v923_v57, 0.0  ;;  %v2402_v46 = vor.u32 %v3476_v6, %v2399_v13  ;;  %1824 = vmatpush.bf16.msra.mxu0 %v2258_v50  ;;  %v2322_v48 = vor.u32 %v2813_v32, %v2319_v25  ;;  %v2845_v53 = vld [vmem:[#allocation11 + $0x1d4] sm:$0xf]  ;;  %v2295_v57 = vld [vmem:[#allocation11 + $0xa8] sm:$0xf0] }
 0x109   :  { %v837_v34 = vsel %vm3491_vm15, %v3433_v14, %v833_v51  ;;  %v847_v22 = vsel %vm3501_vm1, %v3451_v47, %v843_v59  ;;  %v850_v49 = vmul.f32 %v3483_v26, %v849_v35  ;;  %v2466_v28 = vor.u32 %v2849_v54, %v2463_v18  ;;  %v2239_v14 = vld [vmem:[#allocation11 + $0x38] sm:$0xf0]  ;;  %v2791_v54 = vld [vmem:[#allocation11 + $0x24] sm:$0xf]  ;;  %v2231_v51 = vld [vmem:[#allocation11 + $0x28] sm:$0xf0] }
 0x10a   :  { %v3513_v56 = vpack.c.bf16 %v930_v16, %v930_v16  ;;  %v3515_v58 = vpack.c.bf16 %v931_v38, %v931_v38  ;;  %1837 = vmatpush.bf16.msra.mxu1 %v2322_v48  ;;  %v2250_v23 = vor.u32 %v2795_v11, %v2247_v33  ;;  %v2314_v30 = vor.u32 %v2811_v40, %v2311_v17  ;;  %v2807_v59 = vld [vmem:[#allocation11 + $0xa4] sm:$0xf]  ;;  %v2375_v33 = vld [vmem:[#allocation11 + $0x148] sm:$0xf0]  ;;  %v2223_v48 = vld [vmem:[#allocation11 + $0x18] sm:$0xf0] }
 0x10b   :  { %v777_v27 = vsub.f32 %v3312_v37, %v3389_v10  ;;  %v851_v47 = vmul.f32 0.5, %v850_v49  ;;  %v872_v63 = vmul.f32 %v837_v34, %v776_v36  ;;  %vm855_vm2 = vweird.f32 %v3483_v26  ;;  %v3538_v11 = vld [vmem:[#allocation11 + $0x144] sm:$0xf]  ;;  %v2439_v40 = vld [vmem:[#allocation11 + $0x1c8] sm:$0xf0] }
 0x10c   :  { %1752 = vmatmul.bf16.vlgmr.msra.gmra.mxu2 %v3513_v56  ;;  %1765 = vmatmul.bf16.vlgmr.msra.gmra.mxu3 %v3515_v58  ;;  %v882_v2 = vperm.slane %v3327_v62, 4  ;;  %v2394_v37 = vor.u32 %v2831_v45, %v2391_v20  ;;  %v2458_v10 = vor.u32 %v2847_v55, %v2455_v8  ;;  %v2242_v24 = vor.u32 %v2793_v0, %v2239_v14  ;;  %v2843_v35 = vld [vmem:[#allocation11 + $0x1c4] sm:$0xf]  ;;  %v2805_v45 = vld [vmem:[#allocation11 + $0x94] sm:$0xf] }
 0x10d   :  { %v873_v6 = vmul.f32 %v847_v22, %v777_v27  ;;  %v852_v9 = vsub.f32 1.5, %v851_v47  ;;  %1848 = vmatpush.bf16.msra.mxu2 %v2402_v46  ;;  %1861 = vmatpush.bf16.msra.mxu3 %v2466_v28  ;;  %v2306_v13 = vor.u32 %v2809_v61, %v2303_v7  ;;  %v778_v60 = vsub.f32 %v3338_v15, %v3412_v43  ;;  %v2789_v46 = vld [vmem:[#allocation11 + $0x14] sm:$0xf]  ;;  %v2287_v20 = vld [vmem:[#allocation11 + $0x98] sm:$0xf0] }
 0x10e   :  { %v3523_v5 = vpop.eup %2941  ;;  %1825 = vmatpush.bf16.msra.mxu0 %v2250_v23  ;;  %1838 = vmatpush.bf16.msra.mxu1 %v2314_v30  ;;  %vm854_vm3 = vweird.f32 %v3460_v41  ;;  %v2386_v25 = vor.u32 %v2829_v29, %v2383_v1  ;;  %v898_v36 = vmul.f32 %v882_v2, %v872_v63  ;;  %v908_v15 = vperm.slane %v3333_v4, 4  ;;  %v2825_v28 = vld [vmem:[#allocation11 + $0x134] sm:$0xf]  ;;  %v2367_v8 = vld [vmem:[#allocation11 + $0x138] sm:$0xf0] }
 0x10f   :  { %v859_v12 = vmul.f32 %v3523_v5, %v3481_v52  ;;  %v853_v32 = vmul.f32 %v3483_v26, %v852_v9  ;;  %vm3533_vm4 = vmor %vm854_vm3, %vm855_vm2  ;;  %v883_v43 = vperm.slane %v3327_v62, 5  ;;  %v2450_v39 = vor.u32 %v2845_v53, %v2447_v21  ;;  %v2841_v23 = vld [vmem:[#allocation11 + $0x1b4] sm:$0xf]  ;;  %v2431_v27 = vld [vmem:[#allocation11 + $0x1b8] sm:$0xf0] }
 0x110   :  { %v2234_v17 = vor.u32 %v2791_v54, %v2231_v51  ;;  %v909_v44 = vperm.slane %v3333_v4, 5  ;;  %v2298_v38 = vor.u32 %v2807_v59, %v2295_v57  ;;  %v924_v34 = vadd.f32 %v908_v15, %v898_v36  ;;  %v2787_v61 = vld [vmem:[#allocation11 + $0x4] sm:$0xf]  ;;  %v2215_v9 = vld [vmem:[#allocation11 + $0x8] sm:$0xf0] }
 0x111   :  { %v860_v50 = vmul.f32 %v3523_v5, %v859_v12  ;;  %v857_v41 = vsel %vm3533_vm4, %v3483_v26, %v853_v32  ;;  %1849 = vmatpush.bf16.msra.mxu2 %v2394_v37  ;;  %1862 = vmatpush.bf16.msra.mxu3 %v2458_v10  ;;  %v899_v22 = vmul.f32 %v883_v43, %v873_v6  ;;  %vm864_vm5 = vweird.f32 %v3481_v52  ;;  %v2803_v37 = vld [vmem:[#allocation11 + $0x84] sm:$0xf]  ;;  %v2279_v53 = vld [vmem:[#allocation11 + $0x88] sm:$0xf0]  ;;  %v2865_v12 = vld [vmem:[#allocation11 + $0x274] sm:$0xf] }
 0x112   :  { %1826 = vmatpush.bf16.msra.mxu0 %v2242_v24  ;;  %1839 = vmatpush.bf16.msra.mxu1 %v2306_v13  ;;  %v874_v49 = vmul.f32 %v857_v41, %v778_v60  ;;  %v2378_v26 = vor.u32 %v3538_v11, %v2375_v33  ;;  %vm865_vm6 = vweird.f32 %v3523_v5  ;;  %v932_v30 = vmax.f32 %v924_v34, 0.0  ;;  %v2527_v60 = vld [vmem:[#allocation11 + $0x278] sm:$0xf0]  ;;  %v2881_v32 = vld [vmem:[#allocation11 + $0x2f4] sm:$0xf] }
 0x113   :  { %v861_v16 = vmul.f32 0.5, %v860_v50  ;;  %v925_v0 = vadd.f32 %v909_v44, %v899_v22  ;;  %v2442_v14 = vor.u32 %v2843_v35, %v2439_v40  ;;  %v2226_v47 = vor.u32 %v2789_v46, %v2223_v48  ;;  %vm866_vm7 = vmor %vm864_vm5, %vm865_vm6  ;;  %v2359_v59 = vld [vmem:[#allocation11 + $0x128] sm:$0xf0]  ;;  %v2863_v15 = vld [vmem:[#allocation11 + $0x264] sm:$0xf] }
 0x114   :  { %v884_v7 = vperm.slane %v3327_v62, 6  ;;  %v910_v63 = vperm.slane %v3333_v4, 6  ;;  %v2290_v1 = vor.u32 %v2805_v45, %v2287_v20  ;;  %v3552_v2 = vpack.c.bf16 %v932_v30, %v932_v30  ;;  %v2519_v35 = vld [vmem:[#allocation11 + $0x268] sm:$0xf0]  ;;  %v2879_v40 = vld [vmem:[#allocation11 + $0x2e4] sm:$0xf] }
 0x115   :  { %v862_v55 = vsub.f32 1.5, %v861_v16  ;;  %1850 = vmatpush.bf16.msra.mxu2 %v2386_v25  ;;  %1863 = vmatpush.bf16.msra.mxu3 %v2450_v39  ;;  %v933_v6 = vmax.f32 %v925_v0, 0.0  ;;  %v779_v10 = vsub.f32 %v3384_v3, %v3454_v31  ;;  %v885_v24 = vperm.slane %v3327_v62, 7  ;;  %v2591_v3 = vld [vmem:[#allocation11 + $0x2f8] sm:$0xf0] }
 0x116   :  { %1827 = vmatpush.bf16.msra.mxu0 %v2234_v17  ;;  %1840 = vmatpush.bf16.msra.mxu1 %v2298_v38  ;;  %v900_v21 = vmul.f32 %v884_v7, %v874_v49  ;;  %v2370_v54 = vor.u32 %v2825_v28, %v2367_v8  ;;  %v2434_v52 = vor.u32 %v2841_v23, %v2431_v27  ;;  %v2823_v25 = vld [vmem:[#allocation11 + $0x124] sm:$0xf]  ;;  %v911_v18 = vperm.slane %v3333_v4, 7  ;;  %v2583_v17 = vld [vmem:[#allocation11 + $0x2e8] sm:$0xf0] }
 0x117   :  { %v863_v29 = vmul.f32 %v3523_v5, %v862_v55  ;;  %1778 = vmatmul.bf16.vlgmr.msrb.gmra.mxu0 %v3552_v2  ;;  %v3563_v51 = vpack.c.bf16 %v933_v6, %v933_v6  ;;  %v2839_v62 = vld [vmem:[#allocation11 + $0x1a4] sm:$0xf]  ;;  %v2218_v50 = vor.u32 %v2787_v61, %v2215_v9  ;;  %v2282_v11 = vor.u32 %v2803_v37, %v2279_v53  ;;  %v2821_v44 = vld [vmem:[#allocation11 + $0x114] sm:$0xf]  ;;  %v2351_v46 = vld [vmem:[#allocation11 + $0x118] sm:$0xf0] }
 0x118   :  { %v926_v57 = vadd.f32 %v910_v63, %v900_v21  ;;  %v2530_v33 = vor.u32 %v2865_v12, %v2527_v60  ;;  %v2594_v36 = vor.u32 %v2881_v32, %v2591_v3  ;;  %v2362_v39 = vor.u32 %v2823_v25, %v2359_v59  ;;  %v2837_v48 = vld [vmem:[#allocation11 + $0x194] sm:$0xf]  ;;  %v2415_v34 = vld [vmem:[#allocation11 + $0x198] sm:$0xf0]  ;;  %v2819_v0 = vld [vmem:[#allocation11 + $0x104] sm:$0xf] }
 0x119   :  { %v867_v13 = vsel %vm866_vm7, %v3523_v5, %v863_v29  ;;  %1851 = vmatpush.bf16.msra.mxu2 %v2378_v26  ;;  %1864 = vmatpush.bf16.msra.mxu3 %v2442_v14  ;;  %v2423_v5 = vld [vmem:[#allocation11 + $0x1a8] sm:$0xf0]  ;;  %v2522_v22 = vor.u32 %v2863_v15, %v2519_v35  ;;  %v2586_v49 = vor.u32 %v2879_v40, %v2583_v17  ;;  %v2861_v28 = vld [vmem:[#allocation11 + $0x254] sm:$0xf]  ;;  %v2511_v45 = vld [vmem:[#allocation11 + $0x258] sm:$0xf0] }
 0x11a   :  { %v875_v31 = vmul.f32 %v867_v13, %v779_v10  ;;  %1828 = vmatpush.bf16.msra.mxu0 %v2226_v47  ;;  %1841 = vmatpush.bf16.msra.mxu1 %v2290_v1  ;;  %v934_v43 = vmax.f32 %v926_v57, 0.0  ;;  %v2426_v4 = vor.u32 %v2839_v62, %v2423_v5  ;;  %v2877_v20 = vld [vmem:[#allocation11 + $0x2d4] sm:$0xf]  ;;  %v2575_v55 = vld [vmem:[#allocation11 + $0x2d8] sm:$0xf0]  ;;  %v2354_v8 = vor.u32 %v2821_v44, %v2351_v46 }
 0x11b   :  { %1791 = vmatmul.bf16.vlgmr.msrb.gmra.mxu1 %v3563_v51  ;;  %v2418_v23 = vor.u32 %v2837_v48, %v2415_v34  ;;  %v2343_v14 = vld [vmem:[#allocation11 + $0x108] sm:$0xf0]  ;;  %v2835_v27 = vld [vmem:[#allocation11 + $0x184] sm:$0xf]  ;;  %v2897_v61 = vld [vmem:[#allocation11 + $0x374] sm:$0xf]  ;;  %v2514_v1 = vor.u32 %v2861_v28, %v2511_v45  ;;  %v2578_v6 = vor.u32 %v2877_v20, %v2575_v55 }
 0x11c   :  { %v901_v41 = vmul.f32 %v885_v24, %v875_v31  ;;  %v3567_v16 = vpack.c.bf16 %v934_v43, %v934_v43  ;;  %v2407_v47 = vld [vmem:[#allocation11 + $0x188] sm:$0xf0]  ;;  %v2655_v7 = vld [vmem:[#allocation11 + $0x378] sm:$0xf0]  ;;  %v2913_v63 = vld [vmem:[#allocation11 + $0x3f4] sm:$0xf]  ;;  %v2346_v12 = vor.u32 %v2819_v0, %v2343_v14 }
 0x11d   :  { %1852 = vmatpush.bf16.msra.mxu2 %v2370_v54  ;;  %1865 = vmatpush.bf16.msra.mxu3 %v2434_v52  ;;  %v2719_v29 = vld [vmem:[#allocation11 + $0x3f8] sm:$0xf0]  ;;  %v2859_v9 = vld [vmem:[#allocation11 + $0x244] sm:$0xf]  ;;  %v2503_v37 = vld [vmem:[#allocation11 + $0x248] sm:$0xf0]  ;;  %v2410_v21 = vor.u32 %v2835_v27, %v2407_v47  ;;  %v2658_v24 = vor.u32 %v2897_v61, %v2655_v7 }
 0x11e   :  { %v927_v38 = vadd.f32 %v911_v18, %v901_v41  ;;  %1829 = vmatpush.bf16.msra.mxu0 %v2218_v50  ;;  %1842 = vmatpush.bf16.msra.mxu1 %v2282_v11  ;;  %v2875_v10 = vld [vmem:[#allocation11 + $0x2c4] sm:$0xf]  ;;  %v2567_v53 = vld [vmem:[#allocation11 + $0x2c8] sm:$0xf0]  ;;  %v2722_v13 = vor.u32 %v2913_v63, %v2719_v29  ;;  %v2506_v31 = vor.u32 %v2859_v9, %v2503_v37  ;;  %v2857_v25 = vld [vmem:[#allocation11 + $0x234] sm:$0xf] }
 0x11f   :  { %1804 = vmatmul.bf16.vlgmr.msrb.gmra.mxu2 %v3567_v16  ;;  %v2895_v54 = vld [vmem:[#allocation11 + $0x364] sm:$0xf]  ;;  %v2647_v60 = vld [vmem:[#allocation11 + $0x368] sm:$0xf0]  ;;  %v2570_v52 = vor.u32 %v2875_v10, %v2567_v53  ;;  %v2495_v59 = vld [vmem:[#allocation11 + $0x238] sm:$0xf0] }
 0x120   :  { %v935_v26 = vmax.f32 %v927_v38, 0.0  ;;  %v2911_v32 = vld [vmem:[#allocation11 + $0x3e4] sm:$0xf]  ;;  %v2711_v3 = vld [vmem:[#allocation11 + $0x3e8] sm:$0xf0]  ;;  %v2650_v62 = vor.u32 %v2895_v54, %v2647_v60  ;;  %v2498_v15 = vor.u32 %v2857_v25, %v2495_v59 }
 0x121   :  { %1853 = vmatpush.bf16.msra.mxu2 %v2362_v39  ;;  %1866 = vmatpush.bf16.msra.mxu3 %v2426_v4  ;;  %v2873_v57 = vld [vmem:[#allocation11 + $0x2b4] sm:$0xf]  ;;  %v2559_v18 = vld [vmem:[#allocation11 + $0x2b8] sm:$0xf0]  ;;  %v2714_v5 = vor.u32 %v2911_v32, %v2711_v3  ;;  %v2855_v41 = vld [vmem:[#allocation11 + $0x224] sm:$0xf] }
 0x122   :  { %1874 = vmatpush.bf16.msrb.mxu0 %v2530_v33  ;;  %1887 = vmatpush.bf16.msrb.mxu1 %v2594_v36  ;;  %v3570_v30 = vpack.c.bf16 %v935_v26, %v935_v26  ;;  %v2893_v50 = vld [vmem:[#allocation11 + $0x354] sm:$0xf]  ;;  %v2639_v11 = vld [vmem:[#allocation11 + $0x358] sm:$0xf0]  ;;  %v2562_v43 = vor.u32 %v2873_v57, %v2559_v18  ;;  %v2871_v39 = vld [vmem:[#allocation11 + $0x2a4] sm:$0xf] }
 0x123   :  { %v2909_v33 = vld [vmem:[#allocation11 + $0x3d4] sm:$0xf]  ;;  %v2703_v36 = vld [vmem:[#allocation11 + $0x3d8] sm:$0xf0]  ;;  %v2551_v35 = vld [vmem:[#allocation11 + $0x2a8] sm:$0xf0]  ;;  %v2642_v40 = vor.u32 %v2893_v50, %v2639_v11 }
 0x124   :  { %1817 = vmatmul.bf16.vlgmr.msrb.gmra.mxu3 %v3570_v30  ;;  %v2706_v17 = vor.u32 %v2909_v33, %v2703_v36  ;;  %v2891_v4 = vld [vmem:[#allocation11 + $0x344] sm:$0xf]  ;;  %v2631_v44 = vld [vmem:[#allocation11 + $0x348] sm:$0xf0]  ;;  %v2554_v34 = vor.u32 %v2871_v39, %v2551_v35  ;;  %v2543_v26 = vld [vmem:[#allocation11 + $0x298] sm:$0xf0] }
 0x125   :  { %1854 = vmatpush.bf16.msra.mxu2 %v2354_v8  ;;  %1867 = vmatpush.bf16.msra.mxu3 %v2418_v23  ;;  %v2907_v38 = vld [vmem:[#allocation11 + $0x3c4] sm:$0xf]  ;;  %v2695_v46 = vld [vmem:[#allocation11 + $0x3c8] sm:$0xf0]  ;;  %v2634_v28 = vor.u32 %v2891_v4, %v2631_v44  ;;  %v2889_v20 = vld [vmem:[#allocation11 + $0x334] sm:$0xf] }
 0x126   :  { %1875 = vmatpush.bf16.msrb.mxu0 %v2522_v22  ;;  %1888 = vmatpush.bf16.msrb.mxu1 %v2586_v49  ;;  %v2853_v22 = vld [vmem:[#allocation11 + $0x214] sm:$0xf]  ;;  %v2479_v49 = vld [vmem:[#allocation11 + $0x218] sm:$0xf0]  ;;  %v2698_v45 = vor.u32 %v2907_v38, %v2695_v46  ;;  %v2851_v27 = vld [vmem:[#allocation11 + $0x204] sm:$0xf] }
 0x127   :  { %1830 = vmatmul.bf16.vlgmr.msra.gmra.mxu0 %v3443_v19  ;;  %v2487_v19 = vld [vmem:[#allocation11 + $0x228] sm:$0xf0]  ;;  %v2623_v55 = vld [vmem:[#allocation11 + $0x338] sm:$0xf0]  ;;  %v2905_v8 = vld [vmem:[#allocation11 + $0x3b4] sm:$0xf]  ;;  %v2482_v0 = vor.u32 %v2853_v22, %v2479_v49 }
 0x128   :  { %v2490_v48 = vor.u32 %v2855_v41, %v2487_v19  ;;  %v2687_v23 = vld [vmem:[#allocation11 + $0x3b8] sm:$0xf0]  ;;  %v2471_v47 = vld [vmem:[#allocation11 + $0x208] sm:$0xf0]  ;;  %v2626_v7 = vor.u32 %v2889_v20, %v2623_v55  ;;  %v2887_v29 = vld [vmem:[#allocation11 + $0x324] sm:$0xf] }
 0x129   :  { %1855 = vmatpush.bf16.msra.mxu2 %v2346_v12  ;;  %1868 = vmatpush.bf16.msra.mxu3 %v2410_v21  ;;  %v2535_v61 = vld [vmem:[#allocation11 + $0x288] sm:$0xf0]  ;;  %v2690_v63 = vor.u32 %v2905_v8, %v2687_v23  ;;  %v2474_v37 = vor.u32 %v2851_v27, %v2471_v47  ;;  %v2607_v21 = vld [vmem:[#allocation11 + $0x318] sm:$0xf0]  ;;  %v2883_v32 = vld [vmem:[#allocation11 + $0x304] sm:$0xf] }
 0x12a   :  { %1876 = vmatpush.bf16.msrb.mxu0 %v2514_v1  ;;  %1889 = vmatpush.bf16.msrb.mxu1 %v2578_v6  ;;  %v2615_v1 = vld [vmem:[#allocation11 + $0x328] sm:$0xf0]  ;;  %v2903_v6 = vld [vmem:[#allocation11 + $0x3a4] sm:$0xf] }
 0x12b   :  { %1843 = vmatmul.bf16.vlgmr.msra.gmra.mxu1 %v3462_v42  ;;  %v2869_v42 = vld [vmem:[#allocation11 + $0x294] sm:$0xf]  ;;  %v2679_v9 = vld [vmem:[#allocation11 + $0x3a8] sm:$0xf0]  ;;  %v2618_v53 = vor.u32 %v2887_v29, %v2615_v1 }
 0x12c   :  { %v2546_v14 = vor.u32 %v2869_v42, %v2543_v26  ;;  %v2682_v12 = vor.u32 %v2903_v6, %v2679_v9  ;;  %v2599_v3 = vld [vmem:[#allocation11 + $0x308] sm:$0xf0] }
 0x12d   :  { %1900 = vmatpush.bf16.msrb.mxu2 %v2658_v24  ;;  %1913 = vmatpush.bf16.msrb.mxu3 %v2722_v13  ;;  %v2901_v24 = vld [vmem:[#allocation11 + $0x394] sm:$0xf]  ;;  %v2671_v13 = vld [vmem:[#allocation11 + $0x398] sm:$0xf0]  ;;  %v2602_v25 = vor.u32 %v2883_v32, %v2599_v3 }
 0x12e   :  { %1877 = vmatpush.bf16.msrb.mxu0 %v2506_v31  ;;  %1890 = vmatpush.bf16.msrb.mxu1 %v2570_v52  ;;  %v2674_v60 = vor.u32 %v2901_v24, %v2671_v13  ;;  %v2899_v31 = vld [vmem:[#allocation11 + $0x384] sm:$0xf]  ;;  %v2663_v52 = vld [vmem:[#allocation11 + $0x388] sm:$0xf0] }
 0x12f   :  { %1856 = vmatmul.bf16.vlgmr.msra.gmra.mxu2 %v3513_v56  ;;  %v2867_v56 = vld [vmem:[#allocation11 + $0x284] sm:$0xf]  ;;  %v2666_v59 = vor.u32 %v2899_v31, %v2663_v52 }
 0x130   :  { %v2538_v10 = vor.u32 %v2867_v56, %v2535_v61 }
 0x131   :  { %1901 = vmatpush.bf16.msrb.mxu2 %v2650_v62  ;;  %1914 = vmatpush.bf16.msrb.mxu3 %v2714_v5 }
 0x132   :  { %1878 = vmatpush.bf16.msrb.mxu0 %v2498_v15  ;;  %1891 = vmatpush.bf16.msrb.mxu1 %v2562_v43 }
 0x134   :  { %1869 = vmatmul.bf16.vlgmr.msra.gmra.mxu3 %v3515_v58  ;;  %v2885_v58 = vld [vmem:[#allocation11 + $0x314] sm:$0xf] }
 0x135   :  { %1902 = vmatpush.bf16.msrb.mxu2 %v2642_v40  ;;  %1915 = vmatpush.bf16.msrb.mxu3 %v2706_v17  ;;  %v2610_v54 = vor.u32 %v2885_v58, %v2607_v21  ;;  %v1926_v21 = vld [vmem:[#allocation13] sm:$0xff] }
 0x136   :  { %1879 = vmatpush.bf16.msrb.mxu0 %v2490_v48  ;;  %1892 = vmatpush.bf16.msrb.mxu1 %v2554_v34 }
 0x139   :  { %1903 = vmatpush.bf16.msrb.mxu2 %v2634_v28  ;;  %1916 = vmatpush.bf16.msrb.mxu3 %v2698_v45 }
 0x13a   :  { %1880 = vmatpush.bf16.msrb.mxu0 %v2482_v0  ;;  %1893 = vmatpush.bf16.msrb.mxu1 %v2546_v14 }
 0x13d   :  { %1904 = vmatpush.bf16.msrb.mxu2 %v2626_v7  ;;  %1917 = vmatpush.bf16.msrb.mxu3 %v2690_v63 }
 0x13e   :  { %1881 = vmatpush.bf16.msrb.mxu0 %v2474_v37  ;;  %1894 = vmatpush.bf16.msrb.mxu1 %v2538_v10 }
 0x141   :  { %1905 = vmatpush.bf16.msrb.mxu2 %v2618_v53  ;;  %1918 = vmatpush.bf16.msrb.mxu3 %v2682_v12 }
 0x142   :  { %1882 = vmatmul.bf16.vlgmr.msrb.gmra.mxu0 %v3552_v2  ;;  %1895 = vmatmul.bf16.vlgmr.msrb.gmra.mxu1 %v3563_v51  ;;  %v1072_v2 = vld [vmem:[%s3593_s6] sm:$0x3]  ;;  %s3158_s6 = smov [#allocation14]  }
 0x143   :  { %v1074_v51 = vperm.slane %v1072_v2, 0  ;;  %v1075_v45 = vperm.slane %v1072_v2, 1  ;;  %s1940_s17 = sshll.u32 %s3158_s6, 4  ;;  %s1941_s17 = int_to_ptr.vmem [resolvable:$true] %s1940_s17 }
 0x145   :  { %1906 = vmatpush.bf16.msrb.mxu2 %v2610_v54  ;;  %1919 = vmatpush.bf16.msrb.mxu3 %v2674_v60 }
 0x149   :  { %1907 = vmatpush.bf16.msrb.mxu2 %v2602_v25  ;;  %1920 = vmatpush.bf16.msrb.mxu3 %v2666_v59 }
 0x14c   :  { %1908 = vmatmul.bf16.vlgmr.msrb.gmra.mxu2 %v3567_v16  ;;  %1921 = vmatmul.bf16.vlgmr.msrb.gmra.mxu3 %v3570_v30 }
 0x17a   :  { %v1727_v57 = vpop.f32.mrf.mxu0 }
 0x17b   :  { %v1728_v33 = vadd.f32 %v1727_v57, %v1074_v51 }
 0x17d   :  { %v1740_v18 = vpop.f32.mrf.mxu1 }
 0x17e   :  { %v1741_v15 = vadd.f32 %v1740_v18, %v1728_v33 }
 0x182   :  { %v1729_v62 = vpop.f32.mrf.mxu0 }
 0x185   :  { %v1742_v5 = vpop.f32.mrf.mxu1 }
 0x18f   :  { %v1753_v50 = vpop.f32.mrf.mxu2  ;;  %v1766_v11 = vpop.f32.mrf.mxu3 }
 0x190   :  { %v1754_v19 = vadd.f32 %v1753_v50, %v1741_v15 }
 0x192   :  { %v1767_v39 = vadd.f32 %v1766_v11, %v1754_v19 }
 0x194   :  { %v1779_v36 = vpop.f32.mrf.mxu0 }
 0x195   :  { %v1780_v35 = vadd.f32 %v1779_v36, %v1767_v39 }
 0x197   :  { %v1755_v43 = vpop.f32.mrf.mxu2  ;;  %v1768_v41 = vpop.f32.mrf.mxu3 }
 0x198   :  { %v1792_v16 = vpop.f32.mrf.mxu1 }
 0x199   :  { %v1793_v17 = vadd.f32 %v1792_v16, %v1780_v35 }
 0x19c   :  { %v1781_v30 = vpop.f32.mrf.mxu0 }
 0x1a0   :  { %v1794_v40 = vpop.f32.mrf.mxu1 }
 0x1a2   :  { %v1805_v4 = vpop.f32.mrf.mxu2 }
 0x1a3   :  { %v1806_v44 = vadd.f32 %v1805_v4, %v1793_v17 }
 0x1a4   :  { %v1831_v38 = vpop.f32.mrf.mxu0 }
 0x1a5   :  { %v1832_v55 = vadd.f32 %v1831_v38, %v1075_v45 }
 0x1a7   :  { %v1818_v46 = vpop.f32.mrf.mxu3 }
 0x1a8   :  { %v1819_v48 = vadd.f32 %v1818_v46, %v1806_v44  ;;  %v1844_v34 = vpop.f32.mrf.mxu1 }
 0x1a9   :  { %v1845_v14 = vadd.f32 %v1844_v34, %v1832_v55 }
 0x1aa   :  { %1933 = vst [vmem:[#allocation14 + $0x8] sm:$0xff] %v1819_v48  ;;  %v1807_v22 = vpop.f32.mrf.mxu2 }
 0x1ac   :  { %v1833_v49 = vpop.f32.mrf.mxu0 }
 0x1af   :  { %v1820_v42 = vpop.f32.mrf.mxu3 }
 0x1b0   :  { %v1846_v26 = vpop.f32.mrf.mxu1 }
 0x1b2   :  { %v1857_v28 = vpop.f32.mrf.mxu2 }
 0x1b3   :  { %v1858_v27 = vadd.f32 %v1857_v28, %v1845_v14 }
 0x1b7   :  { %v1870_v20 = vpop.f32.mrf.mxu3 }
 0x1b8   :  { %v1871_v56 = vadd.f32 %v1870_v20, %v1858_v27 }
 0x1ba   :  { %v1859_v8 = vpop.f32.mrf.mxu2 }
 0x1bf   :  { %v1883_v23 = vpop.f32.mrf.mxu0  ;;  %v1896_v0 = vpop.f32.mrf.mxu1 }
 0x1c0   :  { %v1872_v47 = vpop.f32.mrf.mxu3  ;;  %v1884_v63 = vadd.f32 %v1883_v23, %v1871_v56 }
 0x1c2   :  { %v1897_v29 = vadd.f32 %v1896_v0, %v1884_v63 }
 0x1c7   :  { %v1885_v61 = vpop.f32.mrf.mxu0  ;;  %v1898_v7 = vpop.f32.mrf.mxu1 }
 0x1cf   :  { %v1909_v1 = vpop.f32.mrf.mxu2  ;;  %v1922_v6 = vpop.f32.mrf.mxu3 }
 0x1d0   :  { %v1910_v9 = vadd.f32 %v1909_v1, %v1897_v29 }
 0x1d2   :  { %v1923_v37 = vadd.f32 %v1922_v6, %v1910_v9 }
 0x1d4   :  { %v1927_v10 = vmul.f32 0.5, %v1923_v37  ;;  %1934 = vst [vmem:[#allocation14 + $0x10] sm:$0xff] %v1923_v37 }
 0x1d6   :  { %v1928_v53 = vmul.f32 1.442695, %v1927_v10 }
 0x1d7   :  { %v1911_v12 = vpop.f32.mrf.mxu2  ;;  %v1924_v58 = vpop.f32.mrf.mxu3 }
 0x1d8   :  { %2943 = vpow2.f32 %v1928_v53 }
 0x1de   :  { %v2944_v24 = vpop.eup %2943 }
 0x1df   :  { %v1930_v13 = vmul.f32 %v2944_v24, %v1926_v21 }
 0x1e1   :  { %v1931_v54 = vadd.f32 %v1930_v13, %v1819_v48 }
 0x1e3   :  { %1932 = vst [vmem:[#allocation14] sm:$0xff] %v1931_v54 }
 0x1e4   :  { %1945 = dma.vmem_to_hbm [thread:$0]  %s1941_s17, 384, %s1943_s1, [#allocation4]  }
 0x1e5   :  { %3145 = dma.done.wait [#allocation4], 384  }
 0x1e6   :  { %3146 = vsyncadd [#allocation4], 4294966912 }
 0x1e7   :  { %1950 = vsyncpa [#allocation3], 1 }
 0x1e8   :  { %1951 = vsyncpa [#allocation6], 1 }
 0x1e9   :  { %1952 = vsyncpa [#allocation9], 1 }
 0x1ea   :  { %1953 = vsyncpa [#allocation12], 1 }
 0x1eb   :  { %1954 = vsyncpa [#allocation4], 1 }

</bundles_post_ra>
